<compile_context>
chip_gen: v7x
topology: tpu7x:2x2x1
jax: 0.10.0
libtpu: 0.0.40
codegen_flags: <defaults>
</compile_context>

<pallas_src>
import functools
import math

import jax
import jax.numpy as jnp
import numpy as np
from jax import lax
from jax.experimental import pallas as pl
from jax.experimental.pallas import tpu as pltpu


def _make_divisible(v, divisor, min_value=None):
    if min_value is None:
        min_value = divisor
    new_v = max(min_value, int(v + divisor / 2) // divisor * divisor)
    if new_v < 0.9 * v:
        new_v += divisor
    return new_v


# ----------------------------- in-kernel helpers -----------------------------


def _dw3x3_packed(x, w_ref, b_ref, C):
    """3x3 depthwise conv, stride 1, zero padding 1, on packed (rows, W*C).

    x: (R, W*C) f32.  w_ref: (9, W*C) with BN scale folded in (row k is tap
    (ky, kx) = (k // 3, k % 3) tiled over W columns).  b_ref: (1, W*C) BN shift.
    Column taps are +-C lane offsets of a zero-padded copy (zero fill == zero
    padding); row taps are +-1 row offsets.  Everything stays in f32 on the VPU.
    """
    R, L = x.shape
    zrow = jnp.zeros((1, L), x.dtype)
    xp = jnp.concatenate([zrow, x, zrow], axis=0)                 # (R+2, L)
    zcol = jnp.zeros((R + 2, C), x.dtype)
    xp = jnp.concatenate([zcol, xp, zcol], axis=1)                # (R+2, L+2C)
    acc = None
    for ky in range(3):
        for kx in range(3):
            k = ky * 3 + kx
            term = xp[ky:ky + R, kx * C:kx * C + L] * w_ref[k:k + 1, :]
            acc = term if acc is None else acc + term
    return acc + b_ref[...]


# ------------------------------- fused kernels -------------------------------


def _sg_chain_kernel(has_dw_first, Cin, Coup, identity, *refs):
    """Fused [dw3x3+BN+ReLU6]? -> 1x1+BN -> 1x1+BN+ReLU6 -> dw3x3+BN [+ x].

    One grid step == one batch image in packed (H, W*C) lane-dense layout.
    The last depthwise is always computed at stride 1 (full resolution); the
    wrapper slices out the stride-2 samples.
    """
    if has_dw_first:
        (x_ref, wdf_ref, bdf_ref, w1_ref, w2_ref, b2_ref,
         wdl_ref, bdl_ref, o_ref) = refs
    else:
        (x_ref, w1_ref, w2_ref, b2_ref, wdl_ref, bdl_ref, o_ref) = refs

    x = x_ref[0].astype(jnp.float32)                              # (H, W*Cin)

    # stage 1: optional depthwise 3x3 (stride 1) + BN + ReLU6
    if has_dw_first:
        t1 = jnp.clip(_dw3x3_packed(x, wdf_ref, bdf_ref, Cin), 0.0, 6.0)
    else:
        t1 = x

    # stage 2: both 1x1 convs as packed block-diagonal MXU matmuls (bf16
    # operands, f32 accumulation).  BN scales are folded into the weights and
    # pw1's shift is folded into b2, so no mid-chain VPU pass is needed.
    h1 = jnp.dot(t1.astype(jnp.bfloat16), w1_ref[...],
                 preferred_element_type=jnp.float32)              # (H, W*Chid)
    z2 = jnp.dot(h1.astype(jnp.bfloat16), w2_ref[...],
                 preferred_element_type=jnp.float32)              # (H, W*Coup)
    z2 = jnp.clip(z2 + b2_ref[...], 0.0, 6.0)
    # TODO(synk): on v6e/v7x the epilogue + depthwise below could run in bf16
    # (native VPU bf16); kept in f32 for v5e portability.

    # stage 3: last depthwise 3x3 (stride 1 here) + BN (+ identity residual)
    y = _dw3x3_packed(z2, wdl_ref, bdl_ref, Coup)
    if identity:
        y = y + x
    o_ref[0] = y.astype(o_ref.dtype)                              # lane-dense store


def _sg_pwpw_kernel(x_ref, w1_ref, w2_ref, b2_ref, o_ref):
    """Fused 1x1+BN -> 1x1+BN+ReLU6 on a flattened (TM, Cin) row tile."""
    a = x_ref[...].astype(jnp.bfloat16)
    h1 = jnp.dot(a, w1_ref[...], preferred_element_type=jnp.float32)
    z2 = jnp.dot(h1.astype(jnp.bfloat16), w2_ref[...],
                 preferred_element_type=jnp.float32)
    o_ref[...] = jnp.clip(z2 + b2_ref[...], 0.0, 6.0).astype(o_ref.dtype)


# ----------------------- host-side weight folding helpers --------------------


def _block_diag(w, W):
    """(Ci, Co) -> (W*Ci, W*Co) block diagonal (one copy per spatial column)."""
    Ci, Co = w.shape
    eye = jnp.eye(W, dtype=w.dtype)
    return jnp.einsum("ab,io->aibo", eye, w).reshape(W * Ci, W * Co)


def _fold_pw_pair(pw1, pw2, W=None):
    """Fold BN scales into the 1x1 weights; push pw1's shift through pw2."""
    w1 = pw1["w"] * pw1["scale"][None, :]
    w2 = pw2["w"] * pw2["scale"][None, :]
    b1 = pw1["shift"]
    b2 = pw2["shift"]
    if W is not None:  # packed / block-diagonal variant
        w1 = _block_diag(w1, W)
        w2 = _block_diag(w2, W)
        b1 = jnp.tile(b1, W)
        b2 = jnp.tile(b2, W)
    b2 = (b2 + b1 @ w2)[None, :]          # fold pw1 shift through pw2 (f32)
    return w1.astype(jnp.bfloat16), w2.astype(jnp.bfloat16), b2


def _fold_dw(dw, W):
    """Depthwise weights -> (9, W*C) with BN scale folded; shift -> (1, W*C)."""
    C = dw["w"].shape[-1]
    w = (dw["w"] * dw["scale"][None, None, :]).reshape(9, C)
    return jnp.tile(w, (1, W)), jnp.tile(dw["shift"], W)[None, :]


# --------------------------------- op wrappers --------------------------------


def _sg_chain_call(x, dw_first, pw1, pw2, dw_last, identity):
    """One fused pallas_call for the [dw]->pw->pw->dw chain (NHWC in/out)."""
    N, H, W, Cin = x.shape
    Chid = pw1["w"].shape[1]
    Coup = pw2["w"].shape[1]
    Lin, Lh, Lout = W * Cin, W * Chid, W * Coup

    xp = x.reshape(N, H, Lin)             # free: NHWC is contiguous
    w1, w2, b2 = _fold_pw_pair(pw1, pw2, W=W)
    wdl, bdl = _fold_dw(dw_last, W)

    def rep(shape):
        return pl.BlockSpec(shape, lambda n: (0,) * len(shape))

    in_specs = [pl.BlockSpec((1, H, Lin), lambda n: (n, 0, 0))]
    args = [xp]
    if dw_first is not None:
        wdf, bdf = _fold_dw(dw_first, W)
        in_specs += [rep((9, Lin)), rep((1, Lin))]
        args += [wdf, bdf]
    in_specs += [rep((Lin, Lh)), rep((Lh, Lout)), rep((1, Lout)),
                 rep((9, Lout)), rep((1, Lout))]
    args += [w1, w2, b2, wdl, bdl]

    kernel = functools.partial(_sg_chain_kernel, dw_first is not None,
                               Cin, Coup, identity)
    out = pl.pallas_call(
        kernel,
        out_shape=jax.ShapeDtypeStruct((N, H, Lout), x.dtype),
        grid=(N,),
        in_specs=in_specs,
        out_specs=pl.BlockSpec((1, H, Lout), lambda n: (n, 0, 0)),
        compiler_params=pltpu.CompilerParams(
            dimension_semantics=("parallel",)),
    )(*args)
    # TODO(synk): for large feature maps, add an H-row-tile grid axis with a
    # 1-2 row halo per tile so VMEM stays O(TH) (needed for v7x's 64 MiB).
    return out.reshape(N, H, W, Coup)


def _pick_rows_tile(M, cap=1024):
    """Largest row tile <= cap that divides M and is a multiple of 8 (else M)."""
    if M <= cap:
        return M
    best = M
    for t in range(8, cap + 1, 8):
        if M % t == 0:
            best = t
    return best


def _sg_pwpw_call(x, pw1, pw2):
    """One fused pallas_call for the pw->pw chain, as a fat flattened GEMM."""
    N, H, W, Cin = x.shape
    Chid = pw1["w"].shape[1]
    Coup = pw2["w"].shape[1]
    M = N * H * W
    xf = x.reshape(M, Cin)                # free reshape
    w1, w2, b2 = _fold_pw_pair(pw1, pw2)
    TM = _pick_rows_tile(M)

    out = pl.pallas_call(
        _sg_pwpw_kernel,
        out_shape=jax.ShapeDtypeStruct((M, Coup), x.dtype),
        grid=(M // TM,),
        in_specs=[pl.BlockSpec((TM, Cin), lambda i: (i, 0)),
                  pl.BlockSpec((Cin, Chid), lambda i: (0, 0)),
                  pl.BlockSpec((Chid, Coup), lambda i: (0, 0)),
                  pl.BlockSpec((1, Coup), lambda i: (0, 0))],
        out_specs=pl.BlockSpec((TM, Coup), lambda i: (i, 0)),
        compiler_params=pltpu.CompilerParams(
            dimension_semantics=("parallel",)),
    )(xf, w1, w2, b2)
    return out.reshape(N, H, W, Coup)


# ---------------------------- parameter construction --------------------------


def _fold_bn(key, c):
    kg, kb, km, kv = jax.random.split(key, 4)
    gamma = 1.0 + 0.1 * jax.random.normal(kg, (c,), jnp.float32)
    beta = 0.1 * jax.random.normal(kb, (c,), jnp.float32)
    mean = 0.1 * jax.random.normal(km, (c,), jnp.float32)
    var = jnp.abs(jax.random.normal(kv, (c,), jnp.float32)) + 0.5
    scale = gamma / jnp.sqrt(var + 1e-5)
    shift = beta - mean * scale
    return scale, shift


def _init_dw(key, c, stride, relu6):
    kw, kb = jax.random.split(key)
    w = 0.1 * jax.random.normal(kw, (3, 3, c), jnp.float32)   # HWC depthwise
    scale, shift = _fold_bn(kb, c)
    return dict(kind="dw", w=w, scale=scale, shift=shift,
                stride=stride, relu6=relu6)


def _init_pw(key, cin, cout, relu6):
    kw, kb = jax.random.split(key)
    w = 0.1 * jax.random.normal(kw, (cin, cout), jnp.float32)  # (Cin, Cout)
    scale, shift = _fold_bn(kb, cout)
    return dict(kind="pw", w=w, scale=scale, shift=shift,
                stride=1, relu6=relu6)


def init_sgblock(key, inp, oup, stride, expand_ratio, keep_3x3=False):
    assert stride in (1, 2)
    hidden_dim = inp // expand_ratio
    if hidden_dim < oup / 6.0:
        hidden_dim = math.ceil(oup / 6.0)
        hidden_dim = _make_divisible(hidden_dim, 16)
    identity = False
    keys = iter(jax.random.split(key, 8))

    if expand_ratio == 2:
        layers = [
            _init_dw(next(keys), inp, 1, True),
            _init_pw(next(keys), inp, hidden_dim, False),
            _init_pw(next(keys), hidden_dim, oup, True),
            _init_dw(next(keys), oup, stride, False),
        ]
    elif inp != oup and stride == 1 and not keep_3x3:
        layers = [
            _init_pw(next(keys), inp, hidden_dim, False),
            _init_pw(next(keys), hidden_dim, oup, True),
        ]
    elif inp != oup and stride == 2 and not keep_3x3:
        layers = [
            _init_pw(next(keys), inp, hidden_dim, False),
            _init_pw(next(keys), hidden_dim, oup, True),
            _init_dw(next(keys), oup, stride, False),
        ]
    else:
        if not keep_3x3:
            identity = True
        layers = [
            _init_dw(next(keys), inp, 1, True),
            _init_pw(next(keys), inp, hidden_dim, False),
            _init_pw(next(keys), hidden_dim, oup, True),
            _init_dw(next(keys), oup, 1, False),
        ]
    return {"layers": layers, "identity": identity}


# ----------------------------------- forward ----------------------------------


def sgblock_forward(params, x_nchw):
    """SGBlock forward. Input/output: NCHW float32 (matches PyTorch)."""
    x = jnp.transpose(x_nchw, (0, 2, 3, 1))            # NCHW -> NHWC
    layers = params["layers"]
    kinds = [op["kind"] for op in layers]
    if kinds == ["pw", "pw"]:
        out = _sg_pwpw_call(x, layers[0], layers[1])
        stride = 1
    elif kinds == ["pw", "pw", "dw"]:
        out = _sg_chain_call(x, None, layers[0], layers[1], layers[2],
                             params["identity"])
        stride = layers[2]["stride"]
    elif kinds == ["dw", "pw", "pw", "dw"]:
        out = _sg_chain_call(x, layers[0], layers[1], layers[2], layers[3],
                             params["identity"])
        stride = layers[3]["stride"]
    else:
        raise NotImplementedError(kinds)
    if stride == 2:
        # TODO(synk): the last depthwise is computed gather-free at stride 1 in
        # the kernel; this plain XLA slice discards the odd rows/cols of a tiny
        # full-resolution map (4x overcompute on the cheapest stage only).
        out = out[:, ::2, ::2, :]
    return jnp.transpose(out, (0, 3, 1, 2))            # NHWC -> NCHW


# --------------------------- pure-JAX reference (check) ------------------------


def sgblock_reference(params, x_nchw):
    out = x_nchw
    for op in params["layers"]:
        if op["kind"] == "dw":
            c = op["w"].shape[-1]
            w = jnp.transpose(op["w"], (2, 0, 1))[:, None, :, :]   # (C,1,3,3)
            out = lax.conv_general_dilated(
                out, w, window_strides=(op["stride"], op["stride"]),
                padding=((1, 1), (1, 1)), feature_group_count=c,
                dimension_numbers=("NCHW", "OIHW", "NCHW"))
        else:
            w = jnp.transpose(op["w"], (1, 0))[:, :, None, None]   # (Cout,Cin,1,1)
            out = lax.conv_general_dilated(
                out, w, window_strides=(1, 1), padding=((0, 0), (0, 0)),
                dimension_numbers=("NCHW", "OIHW", "NCHW"))
        out = out * op["scale"][None, :, None, None] + op["shift"][None, :, None, None]
        if op["relu6"]:
            out = jnp.clip(out, 0.0, 6.0)
    if params["identity"]:
        out = out + x_nchw
    return out


if __name__ == "__main__":
    key = jax.random.PRNGKey(0)
    kx, ka, kb, kc, kd = jax.random.split(key, 5)
    # NCHW input with asymmetric H != W (N=2, C=16, H=16, W=8).
    x = jax.random.normal(kx, (2, 16, 16, 8), jnp.float32)

    configs = [
        # (key, inp, oup, stride, expand_ratio, expected NCHW output shape)
        (ka, 16, 24, 1, 2, (2, 24, 16, 8)),   # dw->pw->pw->dw, no identity
        (kb, 16, 32, 1, 4, (2, 32, 16, 8)),   # pw->pw
        (kc, 16, 24, 2, 4, (2, 24, 8, 4)),    # pw->pw->dw, stride 2 (downsample)
        (kd, 16, 16, 1, 4, (2, 16, 16, 8)),   # identity residual branch
    ]
    for k, inp, oup, stride, er, want_shape in configs:
        params = init_sgblock(k, inp=inp, oup=oup, stride=stride,
                              expand_ratio=er)
        out = jax.block_until_ready(sgblock_forward(params, x))
        ref = jax.block_until_ready(sgblock_reference(params, x))
        assert out.shape == want_shape, (out.shape, want_shape)
        # Kernel uses bf16 MXU operands (f32 accumulate) and host-folded BN;
        # reference uses XLA's default conv precision -> modest tolerance.
        np.testing.assert_allclose(np.asarray(out), np.asarray(ref),
                                   rtol=2e-2, atol=2e-2)

    print("KERNEL_OK")
</pallas_src>

<mosaic_0001>
module attributes {stable_mosaic.version = 11 : i64} {
  func.func @_sg_chain_kernel(%arg0: i32, %arg1: memref<1x16x128xf32, #tpu.memory_space<vmem>>, %arg2: memref<9x128xf32, #tpu.memory_space<vmem>>, %arg3: memref<1x128xf32, #tpu.memory_space<vmem>>, %arg4: memref<128x64xbf16, #tpu.memory_space<vmem>>, %arg5: memref<64x192xbf16, #tpu.memory_space<vmem>>, %arg6: memref<1x192xf32, #tpu.memory_space<vmem>>, %arg7: memref<9x192xf32, #tpu.memory_space<vmem>>, %arg8: memref<1x192xf32, #tpu.memory_space<vmem>>, %arg9: memref<1x16x192xf32, #tpu.memory_space<vmem>>) attributes {dimension_semantics = [#tpu.dimension_semantics<parallel>], iteration_bounds = array<i64: 2>, scalar_prefetch = 0 : i64, scratch_operands = 0 : i64, tpu.core_type = #tpu.core_type<tc>, window_params = [{transform_indices = @transform_0, window_bounds = array<i64: 1, 16, 128>}, {pipeline_mode = #tpu.pipeline_mode<synchronous>, transform_indices = @transform_1, window_bounds = array<i64: 9, 128>}, {pipeline_mode = #tpu.pipeline_mode<synchronous>, transform_indices = @transform_2, window_bounds = array<i64: 1, 128>}, {pipeline_mode = #tpu.pipeline_mode<synchronous>, transform_indices = @transform_3, window_bounds = array<i64: 128, 64>}, {pipeline_mode = #tpu.pipeline_mode<synchronous>, transform_indices = @transform_4, window_bounds = array<i64: 64, 192>}, {pipeline_mode = #tpu.pipeline_mode<synchronous>, transform_indices = @transform_5, window_bounds = array<i64: 1, 192>}, {pipeline_mode = #tpu.pipeline_mode<synchronous>, transform_indices = @transform_6, window_bounds = array<i64: 9, 192>}, {pipeline_mode = #tpu.pipeline_mode<synchronous>, transform_indices = @transform_7, window_bounds = array<i64: 1, 192>}, {transform_indices = @transform_8, window_bounds = array<i64: 1, 16, 192>}]} {
    %c0 = arith.constant 0 : index
    %c0_0 = arith.constant 0 : index
    %c0_1 = arith.constant 0 : index
    %0 = vector.load %arg1[%c0, %c0_0, %c0_1] : memref<1x16x128xf32, #tpu.memory_space<vmem>>, vector<1x16x128xf32>
    %1 = vector.shape_cast %0 : vector<1x16x128xf32> to vector<16x128xf32>
    %cst = arith.constant 0.000000e+00 : f32
    %2 = vector.broadcast %cst : f32 to vector<1x128xf32>
    %3 = tpu.concatenate %2, %1, %2 in 0 : vector<1x128xf32>, vector<16x128xf32>, vector<1x128xf32> -> vector<18x128xf32>
    %cst_2 = arith.constant 0.000000e+00 : f32
    %4 = vector.broadcast %cst_2 : f32 to vector<18x16xf32>
    %5 = tpu.concatenate %4, %3, %4 in 1 : vector<18x16xf32>, vector<18x128xf32>, vector<18x16xf32> -> vector<18x160xf32>
    %6 = vector.extract_strided_slice %5 {offsets = [0, 0], sizes = [16, 128], strides = [1, 1]} : vector<18x160xf32> to vector<16x128xf32>
    %c0_3 = arith.constant 0 : index
    %c0_4 = arith.constant 0 : index
    %7 = vector.load %arg2[%c0_3, %c0_4] : memref<9x128xf32, #tpu.memory_space<vmem>>, vector<1x128xf32>
    %8 = vector.broadcast %7 : vector<1x128xf32> to vector<16x128xf32>
    %9 = arith.mulf %6, %8 : vector<16x128xf32>
    %10 = vector.extract_strided_slice %5 {offsets = [0, 16], sizes = [16, 128], strides = [1, 1]} : vector<18x160xf32> to vector<16x128xf32>
    %c1 = arith.constant 1 : index
    %c0_5 = arith.constant 0 : index
    %11 = vector.load %arg2[%c1, %c0_5] : memref<9x128xf32, #tpu.memory_space<vmem>>, vector<1x128xf32>
    %12 = vector.broadcast %11 : vector<1x128xf32> to vector<16x128xf32>
    %13 = arith.mulf %10, %12 : vector<16x128xf32>
    %14 = arith.addf %9, %13 : vector<16x128xf32>
    %15 = vector.extract_strided_slice %5 {offsets = [0, 32], sizes = [16, 128], strides = [1, 1]} : vector<18x160xf32> to vector<16x128xf32>
    %c2 = arith.constant 2 : index
    %c0_6 = arith.constant 0 : index
    %16 = vector.load %arg2[%c2, %c0_6] : memref<9x128xf32, #tpu.memory_space<vmem>>, vector<1x128xf32>
    %17 = vector.broadcast %16 : vector<1x128xf32> to vector<16x128xf32>
    %18 = arith.mulf %15, %17 : vector<16x128xf32>
    %19 = arith.addf %14, %18 : vector<16x128xf32>
    %20 = vector.extract_strided_slice %5 {offsets = [1, 0], sizes = [16, 128], strides = [1, 1]} : vector<18x160xf32> to vector<16x128xf32>
    %c3 = arith.constant 3 : index
    %c0_7 = arith.constant 0 : index
    %21 = vector.load %arg2[%c3, %c0_7] : memref<9x128xf32, #tpu.memory_space<vmem>>, vector<1x128xf32>
    %22 = vector.broadcast %21 : vector<1x128xf32> to vector<16x128xf32>
    %23 = arith.mulf %20, %22 : vector<16x128xf32>
    %24 = arith.addf %19, %23 : vector<16x128xf32>
    %25 = vector.extract_strided_slice %5 {offsets = [1, 16], sizes = [16, 128], strides = [1, 1]} : vector<18x160xf32> to vector<16x128xf32>
    %c4 = arith.constant 4 : index
    %c0_8 = arith.constant 0 : index
    %26 = vector.load %arg2[%c4, %c0_8] : memref<9x128xf32, #tpu.memory_space<vmem>>, vector<1x128xf32>
    %27 = vector.broadcast %26 : vector<1x128xf32> to vector<16x128xf32>
    %28 = arith.mulf %25, %27 : vector<16x128xf32>
    %29 = arith.addf %24, %28 : vector<16x128xf32>
    %30 = vector.extract_strided_slice %5 {offsets = [1, 32], sizes = [16, 128], strides = [1, 1]} : vector<18x160xf32> to vector<16x128xf32>
    %c5 = arith.constant 5 : index
    %c0_9 = arith.constant 0 : index
    %31 = vector.load %arg2[%c5, %c0_9] : memref<9x128xf32, #tpu.memory_space<vmem>>, vector<1x128xf32>
    %32 = vector.broadcast %31 : vector<1x128xf32> to vector<16x128xf32>
    %33 = arith.mulf %30, %32 : vector<16x128xf32>
    %34 = arith.addf %29, %33 : vector<16x128xf32>
    %35 = vector.extract_strided_slice %5 {offsets = [2, 0], sizes = [16, 128], strides = [1, 1]} : vector<18x160xf32> to vector<16x128xf32>
    %c6 = arith.constant 6 : index
    %c0_10 = arith.constant 0 : index
    %36 = vector.load %arg2[%c6, %c0_10] : memref<9x128xf32, #tpu.memory_space<vmem>>, vector<1x128xf32>
    %37 = vector.broadcast %36 : vector<1x128xf32> to vector<16x128xf32>
    %38 = arith.mulf %35, %37 : vector<16x128xf32>
    %39 = arith.addf %34, %38 : vector<16x128xf32>
    %40 = vector.extract_strided_slice %5 {offsets = [2, 16], sizes = [16, 128], strides = [1, 1]} : vector<18x160xf32> to vector<16x128xf32>
    %c7 = arith.constant 7 : index
    %c0_11 = arith.constant 0 : index
    %41 = vector.load %arg2[%c7, %c0_11] : memref<9x128xf32, #tpu.memory_space<vmem>>, vector<1x128xf32>
    %42 = vector.broadcast %41 : vector<1x128xf32> to vector<16x128xf32>
    %43 = arith.mulf %40, %42 : vector<16x128xf32>
    %44 = arith.addf %39, %43 : vector<16x128xf32>
    %45 = vector.extract_strided_slice %5 {offsets = [2, 32], sizes = [16, 128], strides = [1, 1]} : vector<18x160xf32> to vector<16x128xf32>
    %c8 = arith.constant 8 : index
    %c0_12 = arith.constant 0 : index
    %46 = vector.load %arg2[%c8, %c0_12] : memref<9x128xf32, #tpu.memory_space<vmem>>, vector<1x128xf32>
    %47 = vector.broadcast %46 : vector<1x128xf32> to vector<16x128xf32>
    %48 = arith.mulf %45, %47 : vector<16x128xf32>
    %49 = arith.addf %44, %48 : vector<16x128xf32>
    %c0_13 = arith.constant 0 : index
    %c0_14 = arith.constant 0 : index
    %50 = vector.load %arg3[%c0_13, %c0_14] : memref<1x128xf32, #tpu.memory_space<vmem>>, vector<1x128xf32>
    %51 = vector.broadcast %50 : vector<1x128xf32> to vector<16x128xf32>
    %52 = arith.addf %49, %51 : vector<16x128xf32>
    %cst_15 = arith.constant 0.000000e+00 : f32
    %cst_16 = arith.constant 6.000000e+00 : f32
    %53 = vector.broadcast %cst_15 : f32 to vector<16x128xf32>
    %54 = arith.maximumf %53, %52 : vector<16x128xf32>
    %55 = vector.broadcast %cst_16 : f32 to vector<16x128xf32>
    %56 = arith.minimumf %55, %54 : vector<16x128xf32>
    %57 = arith.truncf %56 : vector<16x128xf32> to vector<16x128xbf16>
    %c0_17 = arith.constant 0 : index
    %c0_18 = arith.constant 0 : index
    %58 = vector.load %arg4[%c0_17, %c0_18] : memref<128x64xbf16, #tpu.memory_space<vmem>>, vector<128x64xbf16>
    %cst_19 = arith.constant dense<0.000000e+00> : vector<16x64xf32>
    %59 = tpu.matmul %57, %58, %cst_19 {dimension_numbers = #tpu.dot_dimension_numbers<[1], [0], [0], [1], [0, 0, 1, 1], [], []>} : vector<16x128xbf16>, vector<128x64xbf16>, vector<16x64xf32> -> vector<16x64xf32>
    %60 = arith.truncf %59 : vector<16x64xf32> to vector<16x64xbf16>
    %c0_20 = arith.constant 0 : index
    %c0_21 = arith.constant 0 : index
    %61 = vector.load %arg5[%c0_20, %c0_21] : memref<64x192xbf16, #tpu.memory_space<vmem>>, vector<64x192xbf16>
    %cst_22 = arith.constant dense<0.000000e+00> : vector<16x192xf32>
    %62 = tpu.matmul %60, %61, %cst_22 {dimension_numbers = #tpu.dot_dimension_numbers<[1], [0], [0], [1], [0, 0, 1, 1], [], []>} : vector<16x64xbf16>, vector<64x192xbf16>, vector<16x192xf32> -> vector<16x192xf32>
    %c0_23 = arith.constant 0 : index
    %c0_24 = arith.constant 0 : index
    %63 = vector.load %arg6[%c0_23, %c0_24] : memref<1x192xf32, #tpu.memory_space<vmem>>, vector<1x192xf32>
    %64 = vector.broadcast %63 : vector<1x192xf32> to vector<16x192xf32>
    %65 = arith.addf %62, %64 : vector<16x192xf32>
    %cst_25 = arith.constant 0.000000e+00 : f32
    %cst_26 = arith.constant 6.000000e+00 : f32
    %66 = vector.broadcast %cst_25 : f32 to vector<16x192xf32>
    %67 = arith.maximumf %66, %65 : vector<16x192xf32>
    %68 = vector.broadcast %cst_26 : f32 to vector<16x192xf32>
    %69 = arith.minimumf %68, %67 : vector<16x192xf32>
    %cst_27 = arith.constant 0.000000e+00 : f32
    %70 = vector.broadcast %cst_27 : f32 to vector<1x192xf32>
    %71 = tpu.concatenate %70, %69, %70 in 0 : vector<1x192xf32>, vector<16x192xf32>, vector<1x192xf32> -> vector<18x192xf32>
    %cst_28 = arith.constant 0.000000e+00 : f32
    %72 = vector.broadcast %cst_28 : f32 to vector<18x24xf32>
    %73 = tpu.concatenate %72, %71, %72 in 1 : vector<18x24xf32>, vector<18x192xf32>, vector<18x24xf32> -> vector<18x240xf32>
    %74 = vector.extract_strided_slice %73 {offsets = [0, 0], sizes = [16, 192], strides = [1, 1]} : vector<18x240xf32> to vector<16x192xf32>
    %c0_29 = arith.constant 0 : index
    %c0_30 = arith.constant 0 : index
    %75 = vector.load %arg7[%c0_29, %c0_30] : memref<9x192xf32, #tpu.memory_space<vmem>>, vector<1x192xf32>
    %76 = vector.broadcast %75 : vector<1x192xf32> to vector<16x192xf32>
    %77 = arith.mulf %74, %76 : vector<16x192xf32>
    %78 = vector.extract_strided_slice %73 {offsets = [0, 24], sizes = [16, 192], strides = [1, 1]} : vector<18x240xf32> to vector<16x192xf32>
    %c1_31 = arith.constant 1 : index
    %c0_32 = arith.constant 0 : index
    %79 = vector.load %arg7[%c1_31, %c0_32] : memref<9x192xf32, #tpu.memory_space<vmem>>, vector<1x192xf32>
    %80 = vector.broadcast %79 : vector<1x192xf32> to vector<16x192xf32>
    %81 = arith.mulf %78, %80 : vector<16x192xf32>
    %82 = arith.addf %77, %81 : vector<16x192xf32>
    %83 = vector.extract_strided_slice %73 {offsets = [0, 48], sizes = [16, 192], strides = [1, 1]} : vector<18x240xf32> to vector<16x192xf32>
    %c2_33 = arith.constant 2 : index
    %c0_34 = arith.constant 0 : index
    %84 = vector.load %arg7[%c2_33, %c0_34] : memref<9x192xf32, #tpu.memory_space<vmem>>, vector<1x192xf32>
    %85 = vector.broadcast %84 : vector<1x192xf32> to vector<16x192xf32>
    %86 = arith.mulf %83, %85 : vector<16x192xf32>
    %87 = arith.addf %82, %86 : vector<16x192xf32>
    %88 = vector.extract_strided_slice %73 {offsets = [1, 0], sizes = [16, 192], strides = [1, 1]} : vector<18x240xf32> to vector<16x192xf32>
    %c3_35 = arith.constant 3 : index
    %c0_36 = arith.constant 0 : index
    %89 = vector.load %arg7[%c3_35, %c0_36] : memref<9x192xf32, #tpu.memory_space<vmem>>, vector<1x192xf32>
    %90 = vector.broadcast %89 : vector<1x192xf32> to vector<16x192xf32>
    %91 = arith.mulf %88, %90 : vector<16x192xf32>
    %92 = arith.addf %87, %91 : vector<16x192xf32>
    %93 = vector.extract_strided_slice %73 {offsets = [1, 24], sizes = [16, 192], strides = [1, 1]} : vector<18x240xf32> to vector<16x192xf32>
    %c4_37 = arith.constant 4 : index
    %c0_38 = arith.constant 0 : index
    %94 = vector.load %arg7[%c4_37, %c0_38] : memref<9x192xf32, #tpu.memory_space<vmem>>, vector<1x192xf32>
    %95 = vector.broadcast %94 : vector<1x192xf32> to vector<16x192xf32>
    %96 = arith.mulf %93, %95 : vector<16x192xf32>
    %97 = arith.addf %92, %96 : vector<16x192xf32>
    %98 = vector.extract_strided_slice %73 {offsets = [1, 48], sizes = [16, 192], strides = [1, 1]} : vector<18x240xf32> to vector<16x192xf32>
    %c5_39 = arith.constant 5 : index
    %c0_40 = arith.constant 0 : index
    %99 = vector.load %arg7[%c5_39, %c0_40] : memref<9x192xf32, #tpu.memory_space<vmem>>, vector<1x192xf32>
    %100 = vector.broadcast %99 : vector<1x192xf32> to vector<16x192xf32>
    %101 = arith.mulf %98, %100 : vector<16x192xf32>
    %102 = arith.addf %97, %101 : vector<16x192xf32>
    %103 = vector.extract_strided_slice %73 {offsets = [2, 0], sizes = [16, 192], strides = [1, 1]} : vector<18x240xf32> to vector<16x192xf32>
    %c6_41 = arith.constant 6 : index
    %c0_42 = arith.constant 0 : index
    %104 = vector.load %arg7[%c6_41, %c0_42] : memref<9x192xf32, #tpu.memory_space<vmem>>, vector<1x192xf32>
    %105 = vector.broadcast %104 : vector<1x192xf32> to vector<16x192xf32>
    %106 = arith.mulf %103, %105 : vector<16x192xf32>
    %107 = arith.addf %102, %106 : vector<16x192xf32>
    %108 = vector.extract_strided_slice %73 {offsets = [2, 24], sizes = [16, 192], strides = [1, 1]} : vector<18x240xf32> to vector<16x192xf32>
    %c7_43 = arith.constant 7 : index
    %c0_44 = arith.constant 0 : index
    %109 = vector.load %arg7[%c7_43, %c0_44] : memref<9x192xf32, #tpu.memory_space<vmem>>, vector<1x192xf32>
    %110 = vector.broadcast %109 : vector<1x192xf32> to vector<16x192xf32>
    %111 = arith.mulf %108, %110 : vector<16x192xf32>
    %112 = arith.addf %107, %111 : vector<16x192xf32>
    %113 = vector.extract_strided_slice %73 {offsets = [2, 48], sizes = [16, 192], strides = [1, 1]} : vector<18x240xf32> to vector<16x192xf32>
    %c8_45 = arith.constant 8 : index
    %c0_46 = arith.constant 0 : index
    %114 = vector.load %arg7[%c8_45, %c0_46] : memref<9x192xf32, #tpu.memory_space<vmem>>, vector<1x192xf32>
    %115 = vector.broadcast %114 : vector<1x192xf32> to vector<16x192xf32>
    %116 = arith.mulf %113, %115 : vector<16x192xf32>
    %117 = arith.addf %112, %116 : vector<16x192xf32>
    %c0_47 = arith.constant 0 : index
    %c0_48 = arith.constant 0 : index
    %118 = vector.load %arg8[%c0_47, %c0_48] : memref<1x192xf32, #tpu.memory_space<vmem>>, vector<1x192xf32>
    %119 = vector.broadcast %118 : vector<1x192xf32> to vector<16x192xf32>
    %120 = arith.addf %117, %119 : vector<16x192xf32>
    %c0_49 = arith.constant 0 : index
    %c0_50 = arith.constant 0 : index
    %c0_51 = arith.constant 0 : index
    %121 = vector.load %arg9[%c0_49, %c0_50, %c0_51] : memref<1x16x192xf32, #tpu.memory_space<vmem>>, vector<1x16x192xf32>
    %122 = vector.shape_cast %121 : vector<1x16x192xf32> to vector<16x192xf32>
    %123 = vector.shape_cast %120 : vector<16x192xf32> to vector<1x16x192xf32>
    tpu.vector_store %arg9[%c0_49, %c0_50, %c0_51], %123 {strides = array<i32>} : memref<1x16x192xf32, #tpu.memory_space<vmem>>, vector<1x16x192xf32>,
    return
  }
  func.func @transform_0(%arg0: i32) -> (i32, i32, i32) {
    %c0_i32 = arith.constant 0 : i32
    %c0_i32_0 = arith.constant 0 : i32
    %c0_i32_1 = arith.constant 0 : i32
    return %arg0, %c0_i32, %c0_i32_0 : i32, i32, i32
  }
  func.func @transform_1(%arg0: i32) -> (i32, i32) {
    %c0_i32 = arith.constant 0 : i32
    %c0_i32_0 = arith.constant 0 : i32
    %c0_i32_1 = arith.constant 0 : i32
    return %c0_i32, %c0_i32_0 : i32, i32
  }
  func.func @transform_2(%arg0: i32) -> (i32, i32) {
    %c0_i32 = arith.constant 0 : i32
    %c0_i32_0 = arith.constant 0 : i32
    %c0_i32_1 = arith.constant 0 : i32
    return %c0_i32, %c0_i32_0 : i32, i32
  }
  func.func @transform_3(%arg0: i32) -> (i32, i32) {
    %c0_i32 = arith.constant 0 : i32
    %c0_i32_0 = arith.constant 0 : i32
    %c0_i32_1 = arith.constant 0 : i32
    return %c0_i32, %c0_i32_0 : i32, i32
  }
  func.func @transform_4(%arg0: i32) -> (i32, i32) {
    %c0_i32 = arith.constant 0 : i32
    %c0_i32_0 = arith.constant 0 : i32
    %c0_i32_1 = arith.constant 0 : i32
    return %c0_i32, %c0_i32_0 : i32, i32
  }
  func.func @transform_5(%arg0: i32) -> (i32, i32) {
    %c0_i32 = arith.constant 0 : i32
    %c0_i32_0 = arith.constant 0 : i32
    %c0_i32_1 = arith.constant 0 : i32
    return %c0_i32, %c0_i32_0 : i32, i32
  }
  func.func @transform_6(%arg0: i32) -> (i32, i32) {
    %c0_i32 = arith.constant 0 : i32
    %c0_i32_0 = arith.constant 0 : i32
    %c0_i32_1 = arith.constant 0 : i32
    return %c0_i32, %c0_i32_0 : i32, i32
  }
  func.func @transform_7(%arg0: i32) -> (i32, i32) {
    %c0_i32 = arith.constant 0 : i32
    %c0_i32_0 = arith.constant 0 : i32
    %c0_i32_1 = arith.constant 0 : i32
    return %c0_i32, %c0_i32_0 : i32, i32
  }
  func.func @transform_8(%arg0: i32) -> (i32, i32, i32) {
    %c0_i32 = arith.constant 0 : i32
    %c0_i32_0 = arith.constant 0 : i32
    %c0_i32_1 = arith.constant 0 : i32
    return %arg0, %c0_i32, %c0_i32_0 : i32, i32, i32
  }
}

</mosaic_0001>

<bundles_post_ra>
// kernel: tpu_custom_call.1
= control target key start
LH: loop header
LB: loop body
LE: loop exit
PB: predicated region body
PF: predicated region fallthrough
CT: control target
= control target key end

     0   :  { %13 = vsyncpa [#allocation3], 0  ;;  %s2461_s0 = inlined_call_operand.vmem [shape: f32[2,16,128], index: 0, kind: input, shape index: {}]   ;;  %s2462_s1 = inlined_call_operand.hbm [shape: f32[9,128], index: 1, kind: input, shape index: {}]   ;;  %s2463_s2 = inlined_call_operand.vmem [shape: f32[1,128], index: 2, kind: input, shape index: {}]   ;;  %s2464_s3 = inlined_call_operand.vmem [shape: bf16[128,64], index: 3, kind: input, shape index: {}]   ;;  %s2465_s4 = inlined_call_operand.vmem [shape: bf16[64,192], index: 4, kind: input, shape index: {}]   ;;  %s2466_s5 = inlined_call_operand.vmem [shape: f32[1,192], index: 5, kind: input, shape index: {}]   ;;  %s2467_s6 = inlined_call_operand.hbm [shape: f32[9,192], index: 6, kind: input, shape index: {}]   ;;  %s2468_s7 = inlined_call_operand.vmem [shape: f32[1,192], index: 7, kind: input, shape index: {}]   ;;  %s2469_s8 = inlined_call_operand.hbm [shape: f32[2,16,192], index: 8, kind: output, shape index: {}]  }
   0x1   :  { %14 = vsyncpa [#allocation6], 0 }
   0x2   :  { %15 = vsyncpa [#allocation4], 0 }
   0x3   :  { %17 = vsyncpa [#allocation4 + $0x1], 0  ;;  %s1849_s27 = smov 0   ;;  %s1851_s28 = smov 0  }
   0x4   :  { %s1853_s29 = smov 0   ;;  %s1855_s30 = smov 0  }
   0x5 LB: > { %2474 = sst [smem:[#allocation11_spill]] %s1779_s29  ;;  %s1870_s9 = sadd.s32 4294967295, %s1783_s30   ;;  %s1783_s30 = sphi %s1855_s30, %s2491_s30   ;;  %s1779_s29 = sphi %s1853_s29, %s2488_s29   ;;  %s1775_s28 = sphi %s1851_s28, %s2490_s28   ;;  %s1771_s27 = sphi %s1849_s27, %s2489_s27  }
   0x6   : > { %s1487_s10 = sadd.s32 4294967294, %s1783_s30   ;;  %s1874_s11 = sadd.s32 1, %s1783_s30  }
   0x7   : > { %s203_s12 = sadd.s32 1, %s1779_s29  ;;  %s200_s13 = ssub.s32 %s1783_s30, %s1874_s11 }
   0x8   : > { %p213_p0 = scmp.ne.s32.totalorder %s1779_s29, %s1775_s28  ;;  %p201_p1 = scmp.eq.s32.totalorder %s200_s13, 0 }
   0x9   : > { %p214_p2 = scmp.eq.s32.totalorder %s1870_s9, 1  ;;  %p219_p3 = scmp.ne.s32.totalorder %s1775_s28, %s1771_s27 }
   0xa   : > { %p220_p4 = scmp.eq.s32.totalorder %s1487_s10, 1  ;;  %p1488_p7 = scmp.ge.s32.totalorder %s1783_s30, 1 }
   0xb   : > { %s1885_s14 = scalar_select %p201_p1, %s1779_s29, %s203_s12  }
   0xc   : > { %p1887_p5 = por %p214_p2, %p213_p0  ;;  %p1891_p6 = por %p220_p4, %p219_p3 }
   0xd   : > { %2475 = sst [smem:[#allocation12_spill]] %s1885_s14  ;;  %p227_p8 = scmp.lt.s32.totalorder %s1783_s30, 3 }
   0xe   : > { %s2476_s15 = scalar_select %p1887_p5, 1, 0 }
   0xf   : > { %s2477_s16 = scalar_select %p1891_p6, 1, 0 }
  0x10   : > { %p2470_p9 = scmp.eq.s32.totalorder %s1870_s9, 0  ;;  %p1898_p10 = pnand %p1488_p7, %p227_p8 }
  0x11   : > { %s1785_s18 = smov [#allocation2]   ;;  %s1786_s21 = smov [#allocation5]  }
  0x12   : > { %s2478_s17 = scalar_select %p1898_p10, 1, 0 }
  0x13   : > { %s239_s19 = sshll.u32 %s1785_s18, 4  ;;  %p1571_p11 = pneg %p1898_p10  ;;  %s240_s19 = int_to_ptr.vmem [resolvable:$true] %s239_s19 }
  0x14   : > { %s264_s22 = sshll.u32 %s1786_s21, 4  ;;  %s1657_s25 = scalar_lea.hbm %s2462_s1, 256  ;;  %s1910_s22 = int_to_ptr.vmem [resolvable:$true] %s264_s22 }
  0x15   : > { %p1906_p12 = pnand %p2470_p9, %p1571_p11  ;;  %p1658_p13 = scmp.ne.s32.totalorder %s2462_s1, %s1657_s25 }
  0x16   : > { %p1664_p3 = scmp.lt.u32.totalorder %s1657_s25, %s2462_s1 }
  0x17   : > { %p1659_p0 = pneg %p1906_p12 }
  0x19   : > { %p1660_p1 = pnand %p1659_p0, %p1658_p13 }
  0x1b   : > { %p1661_p2 = pneg %p1660_p1 }
  0x1d   : > { %p1666_p4 = pnand %p1664_p3, %p1661_p2 }
  0x1f   : > { %1669 = shalt.err (!%p1666_p4)
}
  0x20   : > { %s1670_s18 = scalar_lea.vmem %s240_s19, 256  ;;  %p1678_p9 = scmp.lt.s32.totalorder %s240_s19, %s240_s19 }
  0x21   : > { %p1671_p7 = scmp.ne.s32.totalorder %s240_s19, %s1670_s18  ;;  %p1679_p6 = scmp.lt.s32.totalorder %s1670_s18, %s1670_s18 }
  0x23   : > { %p1673_p8 = pnand %p1671_p7, %p1659_p0  ;;  %p1680_p5 = por %p1679_p6, %p1678_p9 }
  0x25   : > { %p1674_p11 = pneg %p1673_p8 }
  0x27   : > { %p1681_p10 = pnand %p1680_p5, %p1674_p11 }
  0x29   : > { %1684 = shalt.err (!%p1681_p10)
}
  0x2a   : > { %s1787_s21 = smov 128   ;;  %s1788_s23 = smov 8  }
  0x2b   : > { %1574 = dma.hbm_to_vmem [thread:$0]  (!%p1906_p12), %s2462_s1, 256, %s240_s19, [#allocation3], %s1787_s21, %s1787_s21, %s1788_s23  }
  0x2c   : > { %s1685_s12 = scalar_lea.hbm %s2467_s6, 512 }
  0x2d   : > { %p1686_p13 = scmp.ne.s32.totalorder %s2467_s6, %s1685_s12  ;;  %p1692_p9 = scmp.lt.u32.totalorder %s1685_s12, %s2467_s6 }
  0x2f   : > { %p1688_p5 = pnand %p1686_p13, %p1659_p0 }
  0x31   : > { %p1689_p6 = pneg %p1688_p5 }
  0x33   : > { %p1694_p10 = pnand %p1692_p9, %p1689_p6 }
  0x35   : > { %1697 = shalt.err (!%p1694_p10)
}
  0x36   : > { %s1698_s19 = scalar_lea.vmem %s1910_s22, 512  ;;  %p1706_p4 = scmp.lt.s32.totalorder %s1910_s22, %s1910_s22 }
  0x37   : > { %p1699_p1 = scmp.ne.s32.totalorder %s1910_s22, %s1698_s19  ;;  %p1707_p7 = scmp.lt.s32.totalorder %s1698_s19, %s1698_s19 }
  0x39   : > { %p1701_p2 = pnand %p1699_p1, %p1659_p0  ;;  %p1708_p8 = por %p1707_p7, %p1706_p4 }
  0x3b   : > { %p1702_p3 = pneg %p1701_p2 }
  0x3d   : > { %p1709_p11 = pnand %p1708_p8, %p1702_p3 }
  0x3f   : > { %1712 = shalt.err (!%p1709_p11)
}
  0x40   : > { %s1789_s29 = smov 256   ;;  %s1790_s14 = smov 16  }
  0x41   : > { %1577 = dma.hbm_to_vmem [thread:$0]  (!%p1906_p12), %s2467_s6, 512, %s1910_s22, [#allocation6], %s1789_s29, %s1789_s29, %s1790_s14  }
  0x42   : > { %p2480_p13 = scmp.ne.s32.totalorder %s2478_s17, 0 }
  0x43   : > { %p2481_p0 = scmp.eq.s32.totalorder (!%p2480_p13), %s1870_s9, 0 }
  0x44   : > { %291 = sbr.rel (%p2480_p13) target bundleno = 1113 (0x459), region = 52 }
  0x4b   : > { %1758 = dma.done.wait (%p2481_p0), [#allocation3], 256   ;;  %p2482_p5 = pmov %p2481_p0 }
  0x4c   : > { %p2483_p6 = pmov %p2481_p0 }
  0x4d   : > { %1760 = vsyncadd (%p2482_p5), [#allocation3], 4294967040 }
  0x4e   : > { %1762 = dma.done.wait (%p2483_p6), [#allocation6], 512   ;;  %p2484_p9 = pmov %p2481_p0 }
  0x4f   : > { %p329_p10 = scmp.lt.s32.totalorder %s1870_s9, 1  ;;  %v1499_v0 = vld [vmem:[#allocation2 + $0x1] ss:$0 sm:$0xff]  ;;  %vm339_vm0 = vcmask 1040384   ;;  %s1791_s26 = smov 16   ;;  %vm358_vm1 = vcmask 130048  }
  0x50   : > { %1764 = vsyncadd (%p2484_p9), [#allocation6], 4294966784  ;;  %378 = vrot.lane.b32.xlu1 %v1499_v0, %s1791_s26  ;;  %v1502_v8 = vld [vmem:[#allocation2 + $0x4] ss:$0 sm:$0xff]  ;;  %v1500_v9 = vld [vmem:[#allocation2 + $0x2] ss:$0 sm:$0xff] }
  0x51   : > { %s330_s20 = scalar_select %p329_p10, %s1870_s9, 1  ;;  %v1505_v10 = vld [vmem:[#allocation2 + $0x7] ss:$0 sm:$0xff]  ;;  %v1503_v11 = vld [vmem:[#allocation2 + $0x5] ss:$0 sm:$0xff]  ;;  %vm447_vm2 = vcmask 1046528  }
  0x52   : > { %s1792_s10 = smov 32   ;;  %v1506_v12 = vld [vmem:[#allocation2 + $0x8] ss:$0 sm:$0xff]  ;;  %s1793_s12 = smov 112   ;;  %v1501_v35 = vld [vmem:[#allocation2 + $0x3] ss:$0 sm:$0xff] }
  0x53   : > { %s1530_s22 = sshll.u32 %s330_s20, 4  ;;  %s1794_s13 = smov 96   ;;  %v1504_v50 = vld [vmem:[#allocation2 + $0x6] ss:$0 sm:$0xff]  ;;  %vm558_vm3 = vcmask 1045504   ;;  %vm1796_vm4 = vmmov 0  }
  0x54   : > { %s333_s25 = scalar_lea.vmem %s2461_s0, %s1530_s22  ;;  %vm397_vm5 = vcmask 916480   ;;  %vm429_vm6 = vcmask 785408   ;;  %s1798_s22 = smov 24   ;;  %vm838_vm7 = vcmask 523264   ;;  %vm927_vm8 = vcmask 195584  }
  0x55   : > { %v335_v1 = vld [vmem:[%s333_s25] sm:$0xff]  ;;  %v336_v2 = vld [vmem:[%s333_s25 + $0x8] sm:$0xff]  ;;  %s1799_s24 = smov 48   ;;  %vm940_vm9 = vcmask 719872   ;;  %vm1020_vm10 = vcmask 392192   ;;  %vm994_vm11 = vcmask 850944  }
  0x56   : > { %v340_v3 = vrot.slane %v335_v1, 7  ;;  %v341_v4 = vrot.slane %v336_v2, 7  ;;  %vm1040_vm12 = vcmask 654336   ;;  %s1531_s23 = sshll.u32 %s1870_s9, 9  ;;  %p2485_p1 = scmp.ne.s32.totalorder %s2476_s15, 0 }
  0x57   : > { %s1802_s25 = smov [#allocation7]  }
  0x58   : > { %v345_v5 = vsel %vm339_vm0, 0.0, %v340_v3  ;;  %v346_v6 = vsel %vm339_vm0, %v341_v4, 0.0  ;;  %v342_v7 = vsel %vm339_vm0, %v340_v3, %v341_v4 }
  0x59   : > { %349 = vrot.lane.b32.xlu0 %v345_v5, %s1791_s26  ;;  %353 = vrot.lane.b32.xlu1 %v346_v6, %s1791_s26  ;;  %v1637_v5 = vld [vmem:[%s2464_s3] sm:$0xff]  }
  0x5d   : > { %351 = vrot.lane.b32.xlu0 %v342_v7, %s1791_s26  ;;  %463 = vrot.lane.b32.xlu1 %v1502_v8, %s1791_s26 }
  0x61   : > { %410 = vrot.lane.b32.xlu0 %v1500_v9, %s1792_s10  ;;  %574 = vrot.lane.b32.xlu1 %v1505_v10, %s1791_s26 }
  0x65   : > { %508 = vrot.lane.b32.xlu0 %v1503_v11, %s1792_s10 }
  0x69   : > { %619 = vrot.lane.b32.xlu0 %v1506_v12, %s1792_s10  ;;  %s1800_s10 = smov 104  }
  0xc2   : > { %v379_v13 = vpop.permute.xlu1 %378 }
  0xcb   : > { %v350_v14 = vpop.permute.xlu0 %349  ;;  %v354_v17 = vpop.permute.xlu1 %353 }
  0xcc   : > { %v1984_v15 = vsel %vm358_vm1, 0.0, %v350_v14  ;;  %v1987_v16 = vsel %vm358_vm1, %v350_v14, 0.0  ;;  %v2006_v29 = vsel %vm358_vm1, 0.0, %v354_v17  ;;  %v2009_v30 = vsel %vm358_vm1, %v354_v17, 0.0 }
  0xcd   : > { %v381_v18 = vmul.f32 %v379_v13, %v1984_v15  ;;  %v382_v19 = vmul.f32 %v379_v13, %v1987_v16  ;;  %v443_v38 = vmul.f32 %v1501_v35, %v2006_v29  ;;  %v441_v49 = vmul.f32 %v1501_v35, %v1984_v15 }
  0xce   : > { %v552_v59 = vmul.f32 %v1504_v50, %v1984_v15  ;;  %v554_v63 = vmul.f32 %v1504_v50, %v2006_v29 }
  0xcf   : > { %389 = vrot.lane.b32.xlu1 %v381_v18, %s1793_s12  ;;  %391 = vrot.lane.b32.xlu0 %v382_v19, %s1793_s12  ;;  %v352_v20 = vpop.permute.xlu0 %351  ;;  %v464_v25 = vpop.permute.xlu1 %463  ;;  %v451_v54 = vrot.slane %v443_v38, 1  ;;  %v448_v62 = vrot.slane %v441_v49, 1  ;;  %v1638_v19 = vld [vmem:[%s2464_s3 + $0x8] sm:$0xff]  }
  0xd0   : > { %v1994_v21 = vsel %vm358_vm1, 0.0, %v352_v20  ;;  %v1997_v22 = vsel %vm358_vm1, %v352_v20, 0.0  ;;  %v467_v31 = vmul.f32 %v464_v25, %v1987_v16  ;;  %v466_v33 = vmul.f32 %v464_v25, %v1984_v15 }
  0xd1   : > { %v384_v23 = vmul.f32 %v379_v13, %v1997_v22  ;;  %v383_v24 = vmul.f32 %v379_v13, %v1994_v21  ;;  %v469_v32 = vmul.f32 %v464_v25, %v1997_v22  ;;  %v468_v34 = vmul.f32 %v464_v25, %v1994_v21 }
  0xd2   : > { %v471_v36 = vmul.f32 %v464_v25, %v2009_v30  ;;  %v470_v37 = vmul.f32 %v464_v25, %v2006_v29  ;;  %v481_v41 = vrot.slane %v467_v31, 1  ;;  %v478_v44 = vrot.slane %v466_v33, 1 }
  0xd3   : > { %395 = vrot.lane.b32.xlu0 %v384_v23, %s1793_s12  ;;  %393 = vrot.lane.b32.xlu1 %v383_v24, %s1793_s12  ;;  %v411_v26 = vpop.permute.xlu0 %410  ;;  %v482_v42 = vrot.slane %v469_v32, 1  ;;  %v479_v45 = vrot.slane %v468_v34, 1  ;;  %v442_v46 = vmul.f32 %v1501_v35, %v1994_v21  ;;  %v575_v0 = vpop.permute.xlu1 %574  ;;  %v553_v10 = vmul.f32 %v1504_v50, %v1994_v21 }
  0xd4   : > { %v414_v27 = vmul.f32 %v411_v26, %v1987_v16  ;;  %v413_v28 = vmul.f32 %v411_v26, %v1984_v15  ;;  %v416_v39 = vmul.f32 %v411_v26, %v1997_v22  ;;  %v415_v40 = vmul.f32 %v411_v26, %v1994_v21 }
  0xd5   : > { %v486_v47 = vrot.slane %v471_v36, 1  ;;  %v484_v48 = vrot.slane %v470_v37, 1  ;;  %v483_v51 = vsel %vm447_vm2, %v481_v41, %v482_v42  ;;  %v480_v55 = vsel %vm447_vm2, %v478_v44, %v479_v45  ;;  %v1639_v36 = vld [vmem:[%s2464_s3 + $0x10] sm:$0xff]  }
  0xd6   : > { %v449_v58 = vrot.slane %v442_v46, 1  ;;  %v578_v11 = vmul.f32 %v575_v0, %v1987_v16  ;;  %v580_v12 = vmul.f32 %v575_v0, %v1997_v22  ;;  %v1795_v13 = vmov 0.0   ;;  %v1640_v46 = vld [vmem:[%s2464_s3 + $0x18] sm:$0xff]  }
  0xd7   : > { %423 = vrot.lane.b32.xlu0 %v414_v27, %s1794_s13  ;;  %421 = vrot.lane.b32.xlu1 %v413_v28, %s1794_s13  ;;  %v509_v43 = vpop.permute.xlu0 %508  ;;  %v487_v60 = vsel %vm447_vm2, %v482_v42, %v486_v47  ;;  %v485_v61 = vsel %vm447_vm2, %v479_v45, %v484_v48  ;;  %v562_v14 = vrot.slane %v554_v63, 2  ;;  %v577_v17 = vmul.f32 %v575_v0, %v1984_v15  ;;  %v1647_v63 = vld [vmem:[%s2465_s4] ss:$8 sps:$4 sm:$0xff]  }
  0xd8   : > { %v512_v52 = vmul.f32 %v509_v43, %v1987_v16  ;;  %v514_v53 = vmul.f32 %v509_v43, %v1997_v22  ;;  %v511_v56 = vmul.f32 %v509_v43, %v1984_v15  ;;  %v513_v57 = vmul.f32 %v509_v43, %v1994_v21  ;;  %1541 = vmatprep.subr.bf16.mxu0 %v1795_v13 }
  0xd9   : > { %v516_v3 = vmul.f32 %v509_v43, %v2009_v30  ;;  %v515_v4 = vmul.f32 %v509_v43, %v2006_v29  ;;  %v2044_v8 = vsel %vm447_vm2, %v448_v62, %v449_v58  ;;  %v2047_v9 = vsel %vm447_vm2, %v449_v58, %v451_v54  ;;  %1542 = vmatpush3.bf16.msra.mxu0 %v1637_v5  ;;  %v1645_v62 = vld [vmem:[%s2465_s4 + $0x4] ss:$8 sps:$4 sm:$0xff]  }
  0xda   : > { %v526_v1 = vrot.slane %v512_v52, 1  ;;  %v527_v2 = vrot.slane %v514_v53, 1  ;;  %v523_v6 = vrot.slane %v511_v56, 1  ;;  %v524_v7 = vrot.slane %v513_v57, 1  ;;  %1543 = vmatprep.subr.bf16.mxu0 %v1795_v13  ;;  %v1641_v53 = vld [vmem:[%s2464_s3 + $0x20] sm:$0xff]   ;;  %1557 = vmatprep.mubr.msk.bf16.mxu0 %vm1796_vm4, %v1795_v13 }
  0xdb   : > { %427 = vrot.lane.b32.xlu0 %v416_v39, %s1794_s13  ;;  %425 = vrot.lane.b32.xlu1 %v415_v40, %s1794_s13  ;;  %v579_v18 = vmul.f32 %v575_v0, %v1994_v21  ;;  %v559_v20 = vrot.slane %v552_v59, 2  ;;  %v560_v23 = vrot.slane %v553_v10, 2  ;;  %v531_v26 = vrot.slane %v516_v3, 1  ;;  %v620_v37 = vpop.permute.xlu0 %619  ;;  %v1644_v3 = vld [vmem:[%s2464_s3 + $0x38] sm:$0xff]   ;;  %v1651_v5 = vld [vmem:[%s2465_s4 + $0x24] ss:$8 sps:$4 sm:$0xff]  }
  0xdc   : > { %v528_v24 = vsel %vm447_vm2, %v526_v1, %v527_v2  ;;  %v525_v25 = vsel %vm447_vm2, %v523_v6, %v524_v7  ;;  %v529_v27 = vrot.slane %v515_v4, 1  ;;  %v592_v32 = vrot.slane %v578_v11, 2  ;;  %842 = vmatprep.subr.bf16.mxu1 %v1645_v62  ;;  %v1650_v4 = vld [vmem:[%s2465_s4 + $0x10] ss:$8 sps:$4 sm:$0xff]   ;;  %v1653_v6 = vld [vmem:[%s2465_s4 + $0x20] ss:$8 sps:$4 sm:$0xff]  }
  0xdd   : > { %v2066_v28 = vsel %vm558_vm3, %v559_v20, %v560_v23  ;;  %v2069_v31 = vsel %vm558_vm3, %v560_v23, %v562_v14  ;;  %v593_v33 = vrot.slane %v580_v12, 2  ;;  %v589_v34 = vrot.slane %v577_v17, 2  ;;  %1544 = vmatpush3.bf16.msra.mxu0 %v1638_v19  ;;  %843 = vmatpush1.bf16.msra.mxu1 %v1647_v63  ;;  %v1498_v11 = vld [vmem:[#allocation2] ss:$0 sm:$0xff] }
  0xde   : > { %v582_v35 = vmul.f32 %v575_v0, %v2009_v30  ;;  %v532_v38 = vsel %vm447_vm2, %v527_v2, %v531_v26  ;;  %v530_v39 = vsel %vm447_vm2, %v524_v7, %v529_v27  ;;  %v590_v40 = vrot.slane %v579_v18, 2  ;;  %1545 = vmatprep.subr.bf16.mxu0 %v1795_v13  ;;  %v1648_v2 = vld [vmem:[%s2465_s4 + $0x14] ss:$8 sps:$4 sm:$0xff]  }
  0xdf   : > { %490 = vrot.lane.b32.xlu0 %v483_v51, %s1793_s12  ;;  %488 = vrot.lane.b32.xlu1 %v480_v55, %s1793_s12  ;;  %v581_v41 = vmul.f32 %v575_v0, %v2006_v29  ;;  %v594_v42 = vsel %vm558_vm3, %v592_v32, %v593_v33  ;;  %v623_v44 = vmul.f32 %v620_v37, %v1987_v16 }
  0xe0   : > { %v597_v43 = vrot.slane %v582_v35, 2  ;;  %v625_v45 = vmul.f32 %v620_v37, %v1997_v22  ;;  %v591_v47 = vsel %vm558_vm3, %v589_v34, %v590_v40  ;;  %v622_v49 = vmul.f32 %v620_v37, %v1984_v15  ;;  %844 = vmatprep.subr.bf16.mxu1 %v1648_v2 }
  0xe1   : > { %1546 = vmatpush3.bf16.msra.mxu0 %v1639_v36  ;;  %v595_v48 = vrot.slane %v581_v41, 2  ;;  %v624_v50 = vmul.f32 %v620_v37, %v1994_v21  ;;  %v637_v22 = vrot.slane %v623_v44, 2  ;;  %v627_v52 = vmul.f32 %v620_v37, %v2009_v30  ;;  %v1642_v30 = vld [vmem:[%s2464_s3 + $0x28] sm:$0xff]   ;;  %845 = vmatpush1.bf16.msra.mxu1 %v1650_v4 }
  0xe2   : > { %1547 = vmatprep.subr.bf16.mxu0 %v1795_v13  ;;  %v598_v16 = vsel %vm558_vm3, %v593_v33, %v597_v43  ;;  %v638_v51 = vrot.slane %v625_v45, 2  ;;  %v634_v55 = vrot.slane %v622_v49, 2  ;;  %v626_v57 = vmul.f32 %v620_v37, %v2006_v29  ;;  %v1643_v29 = vld [vmem:[%s2464_s3 + $0x30] sm:$0xff]   ;;  %846 = vmatprep.subr.bf16.mxu1 %v1651_v5 }
  0xe3   : > { %494 = vrot.lane.b32.xlu0 %v487_v60, %s1793_s12  ;;  %492 = vrot.lane.b32.xlu1 %v485_v61, %s1793_s12  ;;  %v596_v54 = vsel %vm558_vm3, %v590_v40, %v595_v48  ;;  %v635_v56 = vrot.slane %v624_v50, 2  ;;  %v642_v60 = vrot.slane %v627_v52, 2  ;;  %v370_v17 = vmul.f32 %v1498_v11, %v1984_v15 }
  0xe4   : > { %v639_v58 = vsel %vm558_vm3, %v637_v22, %v638_v51  ;;  %v640_v61 = vrot.slane %v626_v57, 2 }
  0xe5   : > { %1548 = vmatpush3.bf16.msra.mxu0 %v1640_v46  ;;  %v636_v59 = vsel %vm558_vm3, %v634_v55, %v635_v56  ;;  %v643_v0 = vsel %vm558_vm3, %v638_v51, %v642_v60  ;;  %847 = vmatpush1.bf16.msra.mxu1 %v1653_v6  ;;  %v1654_v6 = vld [vmem:[%s2465_s4 + $0x34] ss:$8 sps:$4 sm:$0xff]  }
  0xe6   : > { %1549 = vmatprep.subr.bf16.mxu0 %v1795_v13  ;;  %v641_v1 = vsel %vm558_vm3, %v635_v56, %v640_v61  ;;  %848 = vmatprep.subr.bf16.mxu1 %v1654_v6 }
  0xe7   : > { %535 = vrot.lane.b32.xlu0 %v528_v24, %s1794_s13  ;;  %533 = vrot.lane.b32.xlu1 %v525_v25, %s1794_s13  ;;  %v371_v25 = vmul.f32 %v1498_v11, %v1994_v21  ;;  %v788_v11 = vlaneseq }
  0xe9   : > { %1550 = vmatpush3.bf16.msra.mxu0 %v1641_v53 }
  0xea   : > { %1551 = vmatprep.subr.bf16.mxu0 %v1795_v13 }
  0xeb   : > { %539 = vrot.lane.b32.xlu0 %v532_v38, %s1794_s13  ;;  %537 = vrot.lane.b32.xlu1 %v530_v39, %s1794_s13 }
  0xed   : > { %1552 = vmatpush3.bf16.msra.mxu0 %v1642_v30 }
  0xee   : > { %1553 = vmatprep.subr.bf16.mxu0 %v1795_v13 }
  0xef   : > { %601 = vrot.lane.b32.xlu0 %v594_v42, %s1793_s12  ;;  %599 = vrot.lane.b32.xlu1 %v591_v47, %s1793_s12 }
  0xf1   : > { %1554 = vmatpush3.bf16.msra.mxu0 %v1643_v29 }
  0xf2   : > { %1555 = vmatprep.subr.bf16.mxu0 %v1795_v13 }
  0xf3   : > { %605 = vrot.lane.b32.xlu0 %v598_v16, %s1793_s12  ;;  %603 = vrot.lane.b32.xlu1 %v596_v54, %s1793_s12  ;;  %s1801_s12 = smov 80  }
  0xf5   : > { %1556 = vmatpush3.bf16.msra.mxu0 %v1644_v3 }
  0xf7   : > { %646 = vrot.lane.b32.xlu0 %v639_v58, %s1794_s13  ;;  %644 = vrot.lane.b32.xlu1 %v636_v59, %s1794_s13 }
  0xfb   : > { %650 = vrot.lane.b32.xlu0 %v643_v0, %s1794_s13  ;;  %648 = vrot.lane.b32.xlu1 %v641_v1, %s1794_s13  ;;  %s326_s13 = sand.u32 1, %s1775_s28  }
  0xfc   : > { %s1495_s29 = sshll.u32 %s326_s13, 5  ;;  %s2419_s17 = scalar_lea.sflag [#allocation4], %s326_s13 }
  0xfd   : > { %s328_s14 = scalar_lea.vmem [#allocation7], %s1495_s29 }
  0xfe   : > { %s1403_s21 = sshll.u32 %s328_s14, 4  ;;  %s2409_s21 = int_to_ptr.vmem [resolvable:$true] %s1403_s21 }
  0xff   : > { %s1713_s9 = scalar_lea.vmem %s2409_s21, 512 }
 0x100   : > { %p1714_p12 = scmp.ne.s32.totalorder %s2409_s21, %s1713_s9 }
 0x102   : > { %p1715_p2 = pnand %p1714_p12, %p2485_p1 }
 0x104   : > { %p1716_p3 = pneg %p1715_p2 }
 0x141   : > { %v390_v7 = vpop.permute.xlu1 %389  ;;  %v392_v10 = vpop.permute.xlu0 %391 }
 0x142   : > { %v398_v13 = vsel %vm397_vm5, %v390_v7, %v392_v10  ;;  %v1656_v7 = vld [vmem:[%s2465_s4 + $0x30] ss:$8 sps:$4 sm:$0xff]   ;;  %v1797_v10 = vmov 0  }
 0x143   : > { %v402_v18 = vadd.f32 %v398_v13, %v370_v17  ;;  %874 = vmatprep.mubr.bf16.mxu1 %v1797_v10  ;;  %849 = vmatpush1.bf16.msra.mxu1 %v1656_v7  ;;  %v1052_v7 = vld [vmem:[#allocation5 + $0x3] ss:$8 sm:$0x3] }
 0x145   : > { %v394_v12 = vpop.permute.xlu1 %393  ;;  %v396_v14 = vpop.permute.xlu0 %395 }
 0x146   : > { %v399_v23 = vsel %vm397_vm5, %v394_v12, %v396_v14  ;;  %v789_v12 = vshrl.u32 %v788_v11, 7  ;;  %v961_v14 = vld [vmem:[#allocation5 + $0x1] ss:$8 sm:$0x3] }
 0x147   : > { %v403_v27 = vadd.f32 %v399_v23, %v371_v25 }
 0x148   : > { %v2169_v13 = vsub.s32 0, %v789_v12  ;;  %v2171_v17 = vsub.s32 1, %v789_v12 }
 0x149   : > { %v422_v19 = vpop.permute.xlu1 %421  ;;  %v424_v20 = vpop.permute.xlu0 %423 }
 0x14a   : > { %v430_v24 = vsel %vm429_vm6, %v422_v19, %v424_v20  ;;  %v970_v19 = vrot.slane %v961_v14, %v2171_v17 }
 0x14b   : > { %v434_v26 = vadd.f32 %v430_v24, %v402_v18  ;;  %v966_v18 = vrot.slane %v961_v14, %v2169_v13  ;;  %v1057_v14 = vrot.slane %v1052_v7, %v2169_v13 }
 0x14c   : > { %973 = vrot.lane.b32.xlu0 %v970_v19, %s1798_s22 }
 0x14d   : > { %v426_v32 = vpop.permute.xlu1 %425  ;;  %v428_v33 = vpop.permute.xlu0 %427  ;;  %v455_v34 = vadd.f32 %v2044_v8, %v434_v26  ;;  %971 = vrot.lane.b32.xlu1 %v966_v18, %s1798_s22 }
 0x14e   : > { %v431_v35 = vsel %vm429_vm6, %v426_v32, %v428_v33 }
 0x14f   : > { %v435_v36 = vadd.f32 %v431_v35, %v403_v27  ;;  %v1006_v27 = vld [vmem:[#allocation5 + $0x2] ss:$8 sm:$0x3] }
 0x150   : > { %v1011_v32 = vrot.slane %v1006_v27, %v2169_v13  ;;  %v1015_v33 = vrot.slane %v1006_v27, %v2171_v17 }
 0x151   : > { %v489_v15 = vpop.permute.xlu1 %488  ;;  %v491_v37 = vpop.permute.xlu0 %490  ;;  %v456_v38 = vadd.f32 %v2047_v9, %v435_v36 }
 0x152   : > { %v496_v41 = vsel %vm397_vm5, %v489_v15, %v491_v37  ;;  %1016 = vrot.lane.b32.xlu1 %v1011_v32, %s1799_s24  ;;  %1018 = vrot.lane.b32.xlu0 %v1015_v33, %s1799_s24  ;;  %v786_v15 = vld [vmem:[%s2466_s5] sm:$0x3] }
 0x153   : > { %v500_v42 = vadd.f32 %v496_v41, %v455_v34  ;;  %v1095_v34 = vld [vmem:[#allocation5 + $0x4] ss:$8 sm:$0x3]  ;;  %v791_v37 = vrot.slane %v786_v15, %v2169_v13 }
 0x154   : > { %v1100_v35 = vrot.slane %v1095_v34, %v2169_v13  ;;  %v1104_v36 = vrot.slane %v1095_v34, %v2171_v17 }
 0x155   : > { %v493_v39 = vpop.permute.xlu1 %492  ;;  %v495_v40 = vpop.permute.xlu0 %494 }
 0x156   : > { %v497_v44 = vsel %vm397_vm5, %v493_v39, %v495_v40  ;;  %1105 = vrot.lane.b32.xlu1 %v1100_v35, %s1798_s22  ;;  %1107 = vrot.lane.b32.xlu0 %v1104_v36, %s1798_s22 }
 0x157   : > { %v501_v8 = vadd.f32 %v497_v44, %v456_v38  ;;  %v795_v38 = vrot.slane %v786_v15, %v2171_v17 }
 0x159   : > { %v534_v43 = vpop.permute.xlu1 %533  ;;  %v536_v21 = vpop.permute.xlu0 %535 }
 0x15a   : > { %v541_v45 = vsel %vm429_vm6, %v534_v43, %v536_v21 }
 0x15b   : > { %v545_v46 = vadd.f32 %v541_v45, %v500_v42 }
 0x15d   : > { %v538_v47 = vpop.permute.xlu1 %537  ;;  %v540_v48 = vpop.permute.xlu0 %539  ;;  %v566_v49 = vadd.f32 %v2066_v28, %v545_v46  ;;  %v1507_v28 = vld [vmem:[%s2463_s2] ss:$0 sm:$0xff] }
 0x15e   : > { %v542_v50 = vsel %vm429_vm6, %v538_v47, %v540_v48 }
 0x15f   : > { %v546_v9 = vadd.f32 %v542_v50, %v501_v8 }
 0x161   : > { %v600_v16 = vpop.permute.xlu1 %599  ;;  %v602_v22 = vpop.permute.xlu0 %601  ;;  %v567_v51 = vadd.f32 %v2069_v31, %v546_v9 }
 0x162   : > { %v607_v54 = vsel %vm397_vm5, %v600_v16, %v602_v22 }
 0x163   : > { %v611_v55 = vadd.f32 %v607_v54, %v566_v49 }
 0x165   : > { %v604_v52 = vpop.permute.xlu1 %603  ;;  %v606_v53 = vpop.permute.xlu0 %605 }
 0x166   : > { %v608_v30 = vsel %vm397_vm5, %v604_v52, %v606_v53 }
 0x167   : > { %v612_v60 = vadd.f32 %v608_v30, %v567_v51  ;;  %v1153_v30 = vld [vmem:[#allocation5 + $0x5] ss:$8 sm:$0x3] }
 0x169   : > { %v645_v56 = vpop.permute.xlu1 %644  ;;  %v647_v57 = vpop.permute.xlu0 %646 }
 0x16a   : > { %v652_v58 = vsel %vm429_vm6, %v645_v56, %v647_v57 }
 0x16b   : > { %v656_v59 = vadd.f32 %v652_v58, %v611_v55 }
 0x16d   : > { %v665_v61 = vadd.f32 %v1507_v28, %v656_v59  ;;  %v649_v29 = vpop.permute.xlu1 %648  ;;  %v651_v31 = vpop.permute.xlu0 %650  ;;  %v1158_v59 = vrot.slane %v1153_v30, %v2169_v13 }
 0x16e   : > { %v653_v62 = vsel %vm429_vm6, %v649_v29, %v651_v31 }
 0x16f   : > { %v657_v63 = vadd.f32 %v653_v62, %v612_v60  ;;  %v667_v0 = vmax.f32 %v665_v61, 0.0  ;;  %v1162_v60 = vrot.slane %v1153_v30, %v2171_v17  ;;  %v1254_v61 = vld [vmem:[#allocation5 + $0x7] ss:$8 sm:$0x3] }
 0x170   : > { %v1259_v29 = vrot.slane %v1254_v61, %v2169_v13  ;;  %v1263_v31 = vrot.slane %v1254_v61, %v2171_v17  ;;  %v1312_v62 = vld [vmem:[#allocation5 + $0x10] ss:$8 sm:$0x3]  ;;  %v1211_v61 = vld [vmem:[#allocation5 + $0x6] ss:$8 sm:$0x3] }
 0x171   : > { %v666_v1 = vadd.f32 %v1507_v28, %v657_v63  ;;  %v669_v3 = vmin.f32 %v667_v0, 6.0  ;;  %v1317_v63 = vrot.slane %v1312_v62, %v2169_v13  ;;  %v1321_v0 = vrot.slane %v1312_v62, %v2171_v17 }
 0x173   : > { %v668_v2 = vmax.f32 %v666_v1, 0.0 }
 0x175   : > { %v670_v4 = vmin.f32 %v668_v2, 6.0 }
 0x177   : > { %v671_v5 = vpack.c.bf16 %v670_v4, %v669_v3 }
 0x179   : > { %1558 = vmatmul.mubr.bf16.vlgmr.msra.gmra.mrb[0].mxu0 %v671_v5 }
 0x1be   : > { %v974_v2 = vpop.permute.xlu0 %973 }
 0x1bf   : > { %v972_v1 = vpop.permute.xlu1 %971 }
 0x1c4   : > { %v1017_v3 = vpop.permute.xlu1 %1016  ;;  %v1019_v4 = vpop.permute.xlu0 %1018 }
 0x1c5   : > { %v1021_v36 = vsel %vm1020_vm10, %v1017_v3, %v1019_v4 }
 0x1c8   : > { %v1106_v5 = vpop.permute.xlu1 %1105  ;;  %v1108_v6 = vpop.permute.xlu0 %1107 }
 0x24c   : > { %v770_v20 = vpop.f32.mrb[0].mxu0 }
 0x24d   : > { %v1559_v23 = vpop.f32.mrb[1].mxu0 }
 0x24e   : > { %v773_v24 = vpop.f32.mrb[2].mxu0 }
 0x24f   : > { %v777_v25 = vpack.c.bf16 %v773_v24, %v770_v20  ;;  %v1560_v26 = vpop.f32.mrb[3].mxu0  ;;  %v975_v20 = vsel %vm927_vm8, %v972_v1, %v974_v2  ;;  %v2226_v24 = vrot.slane %v1052_v7, %v2171_v17 }
 0x251   : > { %1524 = vmatmul.mubr.msk.bf16.vlgmr.msra.gmra.mrb[0].mxu1 %vm838_vm7, %v777_v25 }
 0x324   : > { %v876_v39 = vpop.f32.mrb[0].mxu1 }
 0x325   : > { %v877_v40 = vadd.f32 %v876_v39, %v791_v37  ;;  %v878_v41 = vpop.f32.mrb[1].mxu1 }
 0x326   : > { %v879_v42 = vadd.f32 %v878_v41, %v795_v38  ;;  %v880_v43 = vpop.f32.mrb[2].mxu1 }
 0x327   : > { %v885_v21 = vmax.f32 %v877_v40, 0.0  ;;  %v881_v44 = vadd.f32 %v880_v43, %v791_v37  ;;  %v882_v45 = vpop.f32.mrb[3].mxu1 }
 0x328   : > { %v886_v46 = vmax.f32 %v879_v42, 0.0  ;;  %v883_v8 = vadd.f32 %v882_v45, %v795_v38 }
 0x329   : > { %v889_v47 = vmin.f32 %v885_v21, 6.0  ;;  %v887_v48 = vmax.f32 %v881_v44, 0.0  ;;  %v1109_v44 = vsel %vm927_vm8, %v1106_v5, %v1108_v6 }
 0x32a   : > { %v890_v49 = vmin.f32 %v886_v46, 6.0  ;;  %v888_v50 = vmax.f32 %v883_v8, 0.0 }
 0x32b   : > { %v897_v9 = vrot.slane %v889_v47, 7  ;;  %v891_v16 = vmin.f32 %v887_v48, 6.0 }
 0x32c   : > { %v898_v22 = vrot.slane %v890_v49, 7  ;;  %v892_v51 = vmin.f32 %v888_v50, 6.0 }
 0x32d   : > { %v899_v52 = vrot.slane %v891_v16, 7  ;;  %v907_v53 = vsel %vm339_vm0, 0.0, %v897_v9 }
 0x32e   : > { %v901_v54 = vrot.slane %v892_v51, 7  ;;  %915 = vrot.lane.b32.xlu1 %v907_v53, %s1798_s22  ;;  %v908_v55 = vsel %vm339_vm0, 0.0, %v898_v22 }
 0x32f   : > { %917 = vrot.lane.b32.xlu0 %v908_v55, %s1798_s22  ;;  %v900_v56 = vsel %vm339_vm0, %v897_v9, %v899_v52  ;;  %v909_v28 = vsel %vm339_vm0, %v899_v52, 0.0 }
 0x330   : > { %v902_v57 = vsel %vm339_vm0, %v898_v22, %v901_v54  ;;  %v910_v58 = vsel %vm339_vm0, %v901_v54, 0.0 }
 0x332   : > { %919 = vrot.lane.b32.xlu1 %v900_v56, %s1798_s22 }
 0x333   : > { %921 = vrot.lane.b32.xlu0 %v902_v57, %s1798_s22 }
 0x336   : > { %923 = vrot.lane.b32.xlu1 %v909_v28, %s1798_s22 }
 0x337   : > { %925 = vrot.lane.b32.xlu0 %v910_v58, %s1798_s22 }
 0x33a   : > { %1163 = vrot.lane.b32.xlu1 %v1158_v59, %s1799_s24 }
 0x33b   : > { %1165 = vrot.lane.b32.xlu0 %v1162_v60, %s1799_s24 }
 0x33e   : > { %1264 = vrot.lane.b32.xlu1 %v1259_v29, %s1798_s22 }
 0x33f   : > { %1266 = vrot.lane.b32.xlu0 %v1263_v31, %s1798_s22 }
 0x342   : > { %1322 = vrot.lane.b32.xlu1 %v1317_v63, %s1799_s24 }
 0x343   : > { %1324 = vrot.lane.b32.xlu0 %v1321_v0, %s1799_s24  ;;  %s2414_s24 = scalar_lea.hbm %s2469_s8, %s1531_s23 }
 0x3a0   : > { %v916_v10 = vpop.permute.xlu1 %915 }
 0x3a1   : > { %v2216_v11 = vsel %vm927_vm8, 0.0, %v916_v10  ;;  %v918_v12 = vpop.permute.xlu0 %917 }
 0x3a2   : > { %v928_v18 = vsel %vm927_vm8, %v916_v10, %v918_v12  ;;  %v978_v19 = vmul.f32 %v972_v1, %v2216_v11  ;;  %v1064_v33 = vmul.f32 %v1057_v14, %v2216_v11  ;;  %v1024_v35 = vmul.f32 %v1017_v3, %v2216_v11 }
 0x3a3   : > { %v2223_v23 = vsel %vm940_vm9, %v928_v18, 0.0  ;;  %v1112_v51 = vmul.f32 %v1106_v5, %v2216_v11 }
 0x3a4   : > { %986 = vrot.lane.b32.xlu1 %v978_v19, %s1800_s10  ;;  %v920_v25 = vpop.permute.xlu1 %919  ;;  %v979_v26 = vmul.f32 %v975_v20, %v2223_v23  ;;  %v1065_v37 = vmul.f32 %v2226_v24, %v2223_v23  ;;  %v1025_v40 = vmul.f32 %v1021_v36, %v2223_v23  ;;  %v1076_v43 = vrot.slane %v1064_v33, 1 }
 0x3a5   : > { %v2231_v27 = vsel %vm927_vm8, 0.0, %v920_v25  ;;  %v922_v32 = vpop.permute.xlu0 %921  ;;  %v1113_v54 = vmul.f32 %v1109_v44, %v2223_v23  ;;  %v1124_v60 = vrot.slane %v1112_v51, 1  ;;  %v1220_v33 = vrot.slane %v1211_v61, %v2171_v17 }
 0x3a6   : > { %v929_v34 = vsel %vm927_vm8, %v920_v25, %v922_v32  ;;  %988 = vrot.lane.b32.xlu0 %v979_v26, %s1800_s10  ;;  %v2244_v38 = vmul.f32 %v1057_v14, %v2231_v27  ;;  %v980_v46 = vmul.f32 %v972_v1, %v2231_v27  ;;  %v1114_v8 = vmul.f32 %v1106_v5, %v2231_v27 }
 0x3a7   : > { %v2239_v15 = vsel %vm940_vm9, %v929_v34, 0.0  ;;  %v1079_v48 = vrot.slane %v1065_v37, 1  ;;  %v1026_v53 = vmul.f32 %v1017_v3, %v2231_v27  ;;  %v1127_v31 = vrot.slane %v1113_v54, 1 }
 0x3a8   : > { %1032 = vrot.lane.b32.xlu1 %v1024_v35, %s1801_s12  ;;  %v924_v39 = vpop.permute.xlu1 %923  ;;  %v2250_v42 = vmul.f32 %v2226_v24, %v2239_v15  ;;  %v1077_v21 = vrot.slane %v2244_v38, 1  ;;  %v981_v9 = vmul.f32 %v975_v20, %v2239_v15  ;;  %v1115_v16 = vmul.f32 %v1109_v44, %v2239_v15 }
 0x3a9   : > { %v926_v41 = vpop.permute.xlu0 %925  ;;  %v2265_v50 = vsel %vm927_vm8, 0.0, %v924_v39  ;;  %v1125_v57 = vrot.slane %v1114_v8, 1  ;;  %v1027_v28 = vmul.f32 %v1021_v36, %v2239_v15  ;;  %v1226_v51 = vmul.f32 %v1220_v33, %v2239_v15 }
 0x3aa   : > { %v930_v45 = vsel %vm927_vm8, %v924_v39, %v926_v41  ;;  %1034 = vrot.lane.b32.xlu0 %v1025_v40, %s1801_s12  ;;  %v2261_v47 = vsel %vm447_vm2, %v1076_v43, %v1077_v21  ;;  %v1080_v49 = vrot.slane %v2250_v42, 1  ;;  %v1116_v30 = vmul.f32 %v1106_v5, %v2265_v50 }
 0x3ab   : > { %v2271_v22 = vsel %vm940_vm9, %v930_v45, 0.0  ;;  %v1128_v58 = vrot.slane %v1115_v16, 1  ;;  %v1068_v62 = vmul.f32 %v1057_v14, %v2265_v50  ;;  %v1126_v1 = vsel %vm447_vm2, %v1124_v60, %v1125_v57 }
 0x3ac   : > { %990 = vrot.lane.b32.xlu1 %v980_v46, %s1800_s10  ;;  %v2277_v52 = vsel %vm447_vm2, %v1079_v48, %v1080_v49  ;;  %v1164_v55 = vpop.permute.xlu1 %1163  ;;  %v1117_v59 = vmul.f32 %v1109_v44, %v2271_v22  ;;  %v1130_v2 = vrot.slane %v1116_v30, 1  ;;  %v1216_v5 = vrot.slane %v1211_v61, %v2169_v13 }
 0x3ad   : > { %v1166_v56 = vpop.permute.xlu0 %1165  ;;  %v1170_v63 = vmul.f32 %v1164_v55, %v2216_v11  ;;  %v1172_v0 = vmul.f32 %v1164_v55, %v2231_v27  ;;  %v1129_v3 = vsel %vm447_vm2, %v1127_v31, %v1128_v58  ;;  %v1174_v6 = vmul.f32 %v1164_v55, %v2265_v50 }
 0x3ae   : > { %992 = vrot.lane.b32.xlu0 %v981_v9, %s1800_s10  ;;  %v1167_v29 = vsel %vm1020_vm10, %v1164_v55, %v1166_v56  ;;  %v1132_v4 = vrot.slane %v1117_v59, 1  ;;  %v1069_v19 = vmul.f32 %v2226_v24, %v2271_v22  ;;  %v1082_v20 = vrot.slane %v1068_v62, 1 }
 0x3af   : > { %v1171_v7 = vmul.f32 %v1167_v29, %v2223_v23  ;;  %v1173_v10 = vmul.f32 %v1167_v29, %v2239_v15  ;;  %v1175_v12 = vmul.f32 %v1167_v29, %v2271_v22  ;;  %v1131_v25 = vsel %vm447_vm2, %v1125_v57, %v1130_v2 }
 0x3b0   : > { %1036 = vrot.lane.b32.xlu1 %v1026_v53, %s1801_s12  ;;  %v1265_v14 = vpop.permute.xlu1 %1264  ;;  %v1182_v26 = vrot.slane %v1170_v63, 1  ;;  %v1183_v32 = vrot.slane %v1172_v0, 1  ;;  %v1133_v35 = vsel %vm447_vm2, %v1128_v58, %v1132_v4  ;;  %v1223_v36 = vmul.f32 %v1216_v5, %v2216_v11 }
 0x3b1   : > { %v1267_v18 = vpop.permute.xlu0 %1266  ;;  %v1185_v37 = vrot.slane %v1171_v7, 1  ;;  %v1186_v39 = vrot.slane %v1173_v10, 1  ;;  %v1190_v40 = vrot.slane %v1175_v12, 1  ;;  %v1188_v41 = vrot.slane %v1174_v6, 1 }
 0x3b2   : > { %1038 = vrot.lane.b32.xlu0 %v1027_v28, %s1801_s12  ;;  %v1268_v34 = vsel %vm927_vm8, %v1265_v14, %v1267_v18  ;;  %v1271_v24 = vmul.f32 %v1265_v14, %v2216_v11  ;;  %v1273_v43 = vmul.f32 %v1265_v14, %v2231_v27  ;;  %v2314_v44 = vsel %vm447_vm2, %v1077_v21, %v1082_v20 }
 0x3b3   : > { %v1084_v45 = vrot.slane %v1069_v19, 1  ;;  %v1275_v46 = vmul.f32 %v1265_v14, %v2265_v50  ;;  %v1272_v8 = vmul.f32 %v1268_v34, %v2223_v23  ;;  %v1184_v48 = vsel %vm447_vm2, %v1182_v26, %v1183_v32 }
 0x3b4   : > { %1134 = vrot.lane.b32.xlu1 %v1126_v1, %s1800_s10  ;;  %v1224_v9 = vmul.f32 %v1220_v33, %v2223_v23  ;;  %v1274_v16 = vmul.f32 %v1268_v34, %v2239_v15  ;;  %v1225_v21 = vmul.f32 %v1216_v5, %v2231_v27  ;;  %v1187_v53 = vsel %vm447_vm2, %v1185_v37, %v1186_v39 }
 0x3b5   : > { %v2325_v38 = vsel %vm447_vm2, %v1080_v49, %v1084_v45  ;;  %v1189_v54 = vsel %vm447_vm2, %v1183_v32, %v1188_v41  ;;  %v1227_v55 = vmul.f32 %v1216_v5, %v2265_v50  ;;  %v1228_v56 = vmul.f32 %v1220_v33, %v2271_v22  ;;  %v1323_v49 = vpop.permute.xlu1 %1322  ;;  %v1325_v58 = vpop.permute.xlu0 %1324 }
 0x3b6   : > { %1136 = vrot.lane.b32.xlu0 %v1129_v3, %s1800_s10  ;;  %v1235_v57 = vrot.slane %v1223_v36, 2  ;;  %v1236_v30 = vrot.slane %v1225_v21, 2  ;;  %v1238_v42 = vrot.slane %v1224_v9, 2  ;;  %v1239_v28 = vrot.slane %v1226_v51, 2 }
 0x3b7   : > { %v1283_v59 = vrot.slane %v1271_v24, 2  ;;  %v1284_v60 = vrot.slane %v1273_v43, 2  ;;  %v1241_v61 = vrot.slane %v1227_v55, 2  ;;  %v1243_v29 = vrot.slane %v1228_v56, 2 }
 0x3b8   : > { %1138 = vrot.lane.b32.xlu1 %v1131_v25, %s1800_s10  ;;  %v1276_v31 = vmul.f32 %v1268_v34, %v2271_v22  ;;  %v1191_v62 = vsel %vm447_vm2, %v1186_v39, %v1190_v40  ;;  %v2338_v63 = vsel %vm558_vm3, %v1235_v57, %v1236_v30  ;;  %v2341_v0 = vsel %vm558_vm3, %v1238_v42, %v1239_v28  ;;  %v944_v43 = vld [vmem:[#allocation5] ss:$8 sm:$0x3] }
 0x3b9   : > { %v1286_v1 = vrot.slane %v1272_v8, 2  ;;  %v1287_v2 = vrot.slane %v1274_v16, 2  ;;  %v2344_v3 = vsel %vm558_vm3, %v1236_v30, %v1241_v61  ;;  %v2347_v4 = vsel %vm558_vm3, %v1239_v28, %v1243_v29 }
 0x3ba   : > { %1140 = vrot.lane.b32.xlu0 %v1133_v35, %s1800_s10  ;;  %v1326_v5 = vsel %vm1020_vm10, %v1323_v49, %v1325_v58  ;;  %v1329_v6 = vmul.f32 %v1323_v49, %v2216_v11  ;;  %v1331_v7 = vmul.f32 %v1323_v49, %v2231_v27  ;;  %v1285_v10 = vsel %vm558_vm3, %v1283_v59, %v1284_v60 }
 0x3bb   : > { %v1289_v12 = vrot.slane %v1275_v46, 2  ;;  %v1291_v14 = vrot.slane %v1276_v31, 2  ;;  %v1330_v18 = vmul.f32 %v1326_v5, %v2223_v23  ;;  %v1332_v19 = vmul.f32 %v1326_v5, %v2239_v15 }
 0x3bc   : > { %1192 = vrot.lane.b32.xlu1 %v1184_v48, %s1801_s12  ;;  %v1288_v20 = vsel %vm558_vm3, %v1286_v1, %v1287_v2  ;;  %v1333_v25 = vmul.f32 %v1323_v49, %v2265_v50  ;;  %v1341_v32 = vrot.slane %v1329_v6, 2  ;;  %v1342_v33 = vrot.slane %v1331_v7, 2 }
 0x3bd   : > { %v1290_v26 = vsel %vm558_vm3, %v1284_v60, %v1289_v12  ;;  %v1334_v34 = vmul.f32 %v1326_v5, %v2271_v22  ;;  %v1344_v35 = vrot.slane %v1330_v18, 2  ;;  %v1345_v36 = vrot.slane %v1332_v19, 2 }
 0x3be   : > { %1194 = vrot.lane.b32.xlu0 %v1187_v53, %s1801_s12  ;;  %v1292_v37 = vsel %vm558_vm3, %v1287_v2, %v1291_v14  ;;  %v1343_v39 = vsel %vm558_vm3, %v1341_v32, %v1342_v33  ;;  %v1347_v40 = vrot.slane %v1333_v25, 2  ;;  %v953_v45 = vrot.slane %v944_v43, %v2171_v17 }
 0x3bf   : > { %v1349_v50 = vrot.slane %v1334_v34, 2  ;;  %v1346_v41 = vsel %vm558_vm3, %v1344_v35, %v1345_v36  ;;  %v949_v8 = vrot.slane %v944_v43, %v2169_v13 }
 0x3c0   : > { %1196 = vrot.lane.b32.xlu1 %v1189_v54, %s1801_s12  ;;  %v1348_v24 = vsel %vm558_vm3, %v1342_v33, %v1347_v40  ;;  %v957_v9 = vmul.f32 %v953_v45, %v2223_v23  ;;  %v959_v23 = vmul.f32 %v953_v45, %v2239_v15 }
 0x3c1   : > { %v1350_v22 = vsel %vm558_vm3, %v1345_v36, %v1349_v50  ;;  %v956_v21 = vmul.f32 %v949_v8, %v2216_v11  ;;  %v958_v11 = vmul.f32 %v949_v8, %v2231_v27 }
 0x3c2   : > { %1198 = vrot.lane.b32.xlu0 %v1191_v62, %s1801_s12 }
 0x3c4   : > { %1293 = vrot.lane.b32.xlu1 %v1285_v10, %s1800_s10 }
 0x3c6   : > { %1295 = vrot.lane.b32.xlu0 %v1288_v20, %s1800_s10 }
 0x3c8   : > { %1297 = vrot.lane.b32.xlu1 %v1290_v26, %s1800_s10 }
 0x3ca   : > { %1299 = vrot.lane.b32.xlu0 %v1292_v37, %s1800_s10  ;;  %s1717_s10 = sshll.u32 %s1802_s25, 4  ;;  %s1718_s10 = int_to_ptr.vmem [resolvable:$false] %s1717_s10 }
 0x3cb   : > { %p1720_p4 = scmp.lt.s32.totalorder %s2409_s21, %s1718_s10 }
 0x3cc   : > { %1351 = vrot.lane.b32.xlu1 %v1343_v39, %s1801_s12 }
 0x3ce   : > { %1353 = vrot.lane.b32.xlu0 %v1346_v41, %s1801_s12 }
 0x3d0   : > { %1355 = vrot.lane.b32.xlu1 %v1348_v24, %s1801_s12 }
 0x3d2   : > { %1357 = vrot.lane.b32.xlu0 %v1350_v22, %s1801_s12  ;;  %s1719_s12 = scalar_lea.vmem %s1718_s10, 1024 }
 0x3d3   : > { %p1721_p7 = scmp.lt.s32.totalorder %s1719_s12, %s1713_s9 }
 0x3d5   : > { %p1722_p8 = por %p1721_p7, %p1720_p4 }
 0x3d7   : > { %p1723_p11 = pnand %p1722_p8, %p1716_p3 }
 0x416   : > { %v987_v46 = vpop.permute.xlu1 %986 }
 0x418   : > { %v989_v48 = vpop.permute.xlu0 %988 }
 0x419   : > { %v995_v16 = vsel %vm994_vm11, %v987_v46, %v989_v48  ;;  %v1002_v53 = vadd.f32 %v989_v48, %v957_v9 }
 0x41a   : > { %v1033_v51 = vpop.permute.xlu1 %1032  ;;  %v1001_v54 = vadd.f32 %v995_v16, %v956_v21 }
 0x41c   : > { %v1035_v55 = vpop.permute.xlu0 %1034 }
 0x41d   : > { %v1041_v56 = vsel %vm1040_vm12, %v1033_v51, %v1035_v55  ;;  %v1048_v57 = vadd.f32 %v1035_v55, %v1002_v53 }
 0x41e   : > { %v1047_v30 = vadd.f32 %v1041_v56, %v1001_v54  ;;  %v991_v42 = vpop.permute.xlu1 %990 }
 0x41f   : > { %v1091_v28 = vadd.f32 %v2277_v52, %v1048_v57 }
 0x420   : > { %v993_v49 = vpop.permute.xlu0 %992  ;;  %v1090_v58 = vadd.f32 %v2261_v47, %v1047_v30 }
 0x421   : > { %v996_v59 = vsel %vm994_vm11, %v991_v42, %v993_v49  ;;  %v1004_v61 = vadd.f32 %v993_v49, %v959_v23 }
 0x422   : > { %v1037_v60 = vpop.permute.xlu1 %1036  ;;  %v1003_v29 = vadd.f32 %v996_v59, %v958_v11 }
 0x424   : > { %v1039_v31 = vpop.permute.xlu0 %1038 }
 0x425   : > { %v1042_v62 = vsel %vm1040_vm12, %v1037_v60, %v1039_v31  ;;  %v1050_v1 = vadd.f32 %v1039_v31, %v1004_v61 }
 0x426   : > { %v1049_v2 = vadd.f32 %v1042_v62, %v1003_v29  ;;  %v1135_v5 = vpop.permute.xlu1 %1134 }
 0x427   : > { %v1093_v52 = vadd.f32 %v2325_v38, %v1050_v1 }
 0x428   : > { %v1137_v6 = vpop.permute.xlu0 %1136  ;;  %v1092_v47 = vadd.f32 %v2314_v44, %v1049_v2 }
 0x429   : > { %v1142_v10 = vsel %vm994_vm11, %v1135_v5, %v1137_v6  ;;  %v1149_v27 = vadd.f32 %v1137_v6, %v1091_v28 }
 0x42a   : > { %v1139_v7 = vpop.permute.xlu1 %1138  ;;  %v1148_v14 = vadd.f32 %v1142_v10, %v1090_v58 }
 0x42c   : > { %v1141_v15 = vpop.permute.xlu0 %1140 }
 0x42d   : > { %v1143_v19 = vsel %vm994_vm11, %v1139_v7, %v1141_v15  ;;  %v1151_v38 = vadd.f32 %v1141_v15, %v1093_v52 }
 0x42e   : > { %v1193_v12 = vpop.permute.xlu1 %1192  ;;  %v1150_v44 = vadd.f32 %v1143_v19, %v1092_v47 }
 0x430   : > { %v1195_v18 = vpop.permute.xlu0 %1194 }
 0x431   : > { %v1200_v20 = vsel %vm1040_vm12, %v1193_v12, %v1195_v18  ;;  %v1207_v25 = vadd.f32 %v1195_v18, %v1149_v27 }
 0x432   : > { %v1206_v26 = vadd.f32 %v1200_v20, %v1148_v14  ;;  %v1197_v32 = vpop.permute.xlu1 %1196 }
 0x433   : > { %v1250_v33 = vadd.f32 %v2341_v0, %v1207_v25  ;;  %v1369_v0 = vld [vmem:[%s2468_s7] sm:$0x3] }
 0x434   : > { %v1199_v34 = vpop.permute.xlu0 %1198  ;;  %v1249_v35 = vadd.f32 %v2338_v63, %v1206_v26  ;;  %v1378_v8 = vrot.slane %v1369_v0, %v2171_v17 }
 0x435   : > { %v1201_v36 = vsel %vm1040_vm12, %v1197_v32, %v1199_v34  ;;  %v1209_v37 = vadd.f32 %v1199_v34, %v1151_v38 }
 0x436   : > { %v1208_v39 = vadd.f32 %v1201_v36, %v1150_v44  ;;  %v1294_v40 = vpop.permute.xlu1 %1293 }
 0x437   : > { %v1252_v50 = vadd.f32 %v2347_v4, %v1209_v37  ;;  %v1374_v4 = vrot.slane %v1369_v0, %v2169_v13 }
 0x438   : > { %v1296_v41 = vpop.permute.xlu0 %1295  ;;  %v1251_v24 = vadd.f32 %v2344_v3, %v1208_v39 }
 0x439   : > { %v1301_v45 = vsel %vm994_vm11, %v1294_v40, %v1296_v41  ;;  %v1308_v46 = vadd.f32 %v1296_v41, %v1250_v33 }
 0x43a   : > { %v1298_v22 = vpop.permute.xlu1 %1297  ;;  %v1307_v48 = vadd.f32 %v1301_v45, %v1249_v35 }
 0x43c   : > { %v1300_v43 = vpop.permute.xlu0 %1299 }
 0x43d   : > { %v1302_v3 = vsel %vm994_vm11, %v1298_v22, %v1300_v43  ;;  %v1310_v53 = vadd.f32 %v1300_v43, %v1252_v50 }
 0x43e   : > { %v1352_v63 = vpop.permute.xlu1 %1351  ;;  %v1309_v55 = vadd.f32 %v1302_v3, %v1251_v24 }
 0x440   : > { %v1354_v9 = vpop.permute.xlu0 %1353 }
 0x441   : > { %v1359_v16 = vsel %vm1040_vm12, %v1352_v63, %v1354_v9  ;;  %v1366_v21 = vadd.f32 %v1354_v9, %v1308_v46 }
 0x442   : > { %v1365_v51 = vadd.f32 %v1359_v16, %v1307_v48  ;;  %v1356_v57 = vpop.permute.xlu1 %1355 }
 0x443   : > { %v1382_v54 = vadd.f32 %v1378_v8, %v1366_v21 }
 0x444   : > { %v1381_v56 = vadd.f32 %v1374_v4, %v1365_v51  ;;  %v1358_v17 = vpop.permute.xlu0 %1357 }
 0x445   : > { %1386 = vst.msk [vmem:[%s328_s14 + $0x8] sm:$0xff] %vm838_vm7, %v1382_v54  ;;  %v1360_v13 = vsel %vm1040_vm12, %v1356_v57, %v1358_v17  ;;  %v1368_v30 = vadd.f32 %v1358_v17, %v1310_v53 }
 0x446   : > { %1385 = vst [vmem:[%s328_s14] sm:$0xff] %v1381_v56  ;;  %v1367_v42 = vadd.f32 %v1360_v13, %v1309_v55 }
 0x447   : > { %v1384_v28 = vadd.f32 %v1378_v8, %v1368_v30 }
 0x448   : > { %v1383_v49 = vadd.f32 %v1374_v4, %v1367_v42 }
 0x449   : > { %1388 = vst.msk [vmem:[%s328_s14 + $0x18] sm:$0xff] %vm838_vm7, %v1384_v28 }
 0x44a   : > { %1387 = vst [vmem:[%s328_s14 + $0x10] sm:$0xff] %v1383_v49 }
 0x44b   : > { %1726 = shalt.err (!%p1723_p11)
}
 0x44c   : > { %s1727_s13 = scalar_lea.hbm %s2414_s24, 512  ;;  %s1731_s29 = scalar_lea.hbm %s2469_s8, 1024 }
 0x44d   : > { %p1728_p13 = scmp.ne.s32.totalorder %s2414_s24, %s1727_s13  ;;  %p1732_p6 = scmp.lt.u32.totalorder %s2414_s24, %s2469_s8 }
 0x44e   : > { %p1733_p9 = scmp.lt.u32.totalorder %s1731_s29, %s1727_s13  ;;  %p1735_p12 = scmp.lt.u32.totalorder %s1727_s13, %s2414_s24 }
 0x44f   : > { %p1729_p0 = pnand %p1728_p13, %p2485_p1 }
 0x450   : > { %p1734_p10 = por %p1733_p9, %p1732_p6 }
 0x451   : > { %p1730_p5 = pneg %p1729_p0 }
 0x452   : > { %p1736_p2 = por %p1735_p12, %p1734_p10 }
 0x454   : > { %p1737_p3 = pnand %p1736_p2, %p1730_p5 }
 0x456   : > { %1740 = shalt.err (!%p1737_p3)
}
 0x457   : > { %s1803_s20 = smov 256  }
 0x458   : > { %1569 = dma.vmem_to_hbm [thread:$0]  (%p2485_p1), %s2409_s21, 512, %s2414_s24, %s2419_s17, %s1803_s20, %s1803_s20, %s1791_s26  }
 0x459 PF: > { %p1586_p4 = scmp.ge.s32.totalorder %s1783_s30, 2  ;;  %s1418_s22 = sand.u32 1, %s1771_s27  }
 0x45a   : > { %p2486_p7 = scmp.ne.s32.totalorder %s2477_s16, 0  ;;  %s1419_s9 = scalar_lea.sflag [#allocation4], %s1418_s22 }
 0x45c   : > { %p1579_p8 = pnand %p1586_p4, %p2486_p7 }
 0x45e   : > { %1766 = dma.done.wait (!%p1579_p8), %s1419_s9, 512  }
 0x45f   : > { %1768 = vsyncadd (!%p1579_p8), %s1419_s9, 4294966784  ;;  %s2487_s25 = sld [smem:[#allocation11_spill]]  ;;  %s2488_s29 = sld [smem:[#allocation12_spill]] }
 0x460   : > { %p20_p11 = scmp.ge.s32.totalorder %s1874_s11, 4   ;;  %s2489_s27 = smov %s1775_s28 }
 0x461   : > { %s2491_s30 = smov %s1874_s11 }
 0x462   :  { %22 = sbr.rel (!%p20_p11) target bundleno = 5 (0x5), region = 104 }
 0x465   : > { %s2490_s28 = smov %s2487_s25 }
 0x469   :  { %1424 = vsyncpa [#allocation3], 1 }
 0x46a   :  { %1426 = vsyncpa [#allocation3 + $0x1], 1 }
 0x46b   :  { %1427 = vsyncpa [#allocation6], 1 }
 0x46c   :  { %1428 = vsyncpa [#allocation4], 1 }
 0x46d   :  { %1430 = vsyncpa [#allocation4 + $0x1], 1 }

</bundles_post_ra>
